<compile_context>
chip_gen: v6e
topology: v6e:2x2x1
jax: 0.10.0
libtpu: 0.0.40
codegen_flags: <defaults>
</compile_context>

<pallas_src>
import functools
import math

import jax
import jax.numpy as jnp
from jax import lax
from jax.experimental import pallas as pl
from jax.experimental.pallas import tpu as pltpu


# ---------------------------------------------------------------------------
# Kernel: one (batch, head) tile per grid step; head axis is a reduction.
# ---------------------------------------------------------------------------
def cross_block_kernel(
    x01_ref,
    wqk_ref, bqk_ref,
    wv_ref, bv_ref,
    wout_ref, bout_ref,
    w1a_ref, w1b_ref, b1_ref,
    ln_g_ref, ln_b_ref,
    w2_ref, b2_ref,
    o_ref,
    acc_ref,
    *, n_tok: int,
):
    bf16 = jnp.bfloat16
    h = pl.program_id(1)
    n_heads = pl.num_programs(1)

    x01_f32 = x01_ref[0]                                   # (2N, D) f32 (residual path)
    x01 = x01_f32.astype(bf16)                             # bf16 MXU operand

    # ---- per-head qk/v projections (dim_head**-0.25 scale pre-folded into wqk/bqk) ----
    qk01 = jnp.dot(x01, wqk_ref[0], preferred_element_type=jnp.float32) + bqk_ref[0]
    v01 = jnp.dot(x01, wv_ref[0], preferred_element_type=jnp.float32) + bv_ref[0]
    qk0 = qk01[:n_tok].astype(bf16)                        # (N, Dh)
    qk1 = qk01[n_tok:].astype(bf16)
    v0 = v01[:n_tok].astype(bf16)
    v1 = v01[n_tok:].astype(bf16)

    # ---- bidirectional attention for this head; a single full-size exp ----
    # sim[i, j] = <qk0[i], qk1[j]>   (i: x0 tokens, j: x1 tokens)
    sim = lax.dot_general(qk0, qk1, (((1,), (1,)), ((), ())),
                          preferred_element_type=jnp.float32)          # (N, N) f32
    rowmax = jnp.max(sim, axis=-1, keepdims=True)                      # (N, 1)
    gmax = jnp.max(rowmax, axis=0, keepdims=True)                      # (1, 1) shared max
    p = jnp.exp(sim - rowmax)                                          # (N, N) in (0, 1]; sim dead after this

    # direction 0 -> 1: softmax over keys j (row sums >= 1, no guard needed)
    attn01 = (p * pl.reciprocal(jnp.sum(p, axis=-1, keepdims=True),
                                approx=True)).astype(bf16)

    # direction 1 -> 0: softmax over queries i, derived from p via the rank-1
    # correction exp(rowmax - gmax) <= 1  (q == exp(sim - gmax); no overflow).
    q = p * jnp.exp(rowmax - gmax)
    colsum = jnp.maximum(jnp.sum(q, axis=0, keepdims=True), 1e-30)     # underflow guard
    attn10_t = (q * pl.reciprocal(colsum, approx=True)).astype(bf16)

    m0 = jnp.dot(attn01, v1, preferred_element_type=jnp.float32)       # (N, Dh)
    # m1[j, d] = sum_i attn10_t[i, j] * v0[i, d]  (no materialized sim^T)
    m1 = lax.dot_general(attn10_t, v0, (((0,), (0,)), ((), ())),
                         preferred_element_type=jnp.float32)           # (N, Dh)
    m01 = jnp.concatenate([m0.astype(bf16), m1.astype(bf16)], axis=0)  # (2N, Dh) bf16

    # ---- accumulate the to_out projection across heads ----
    @pl.when(h == 0)
    def _():
        acc_ref[...] = jnp.broadcast_to(bout_ref[...], acc_ref.shape)

    acc_ref[...] += jnp.dot(m01, wout_ref[0], preferred_element_type=jnp.float32)

    # ---- last head: shared FFN (split W1, no concat), residual, one lane-dense store ----
    @pl.when(h == n_heads - 1)
    def _():
        m_out = acc_ref[...]                                           # (2N, D) f32
        y = (jnp.dot(x01, w1a_ref[...], preferred_element_type=jnp.float32)
             + jnp.dot(m_out.astype(bf16), w1b_ref[...],
                       preferred_element_type=jnp.float32)
             + b1_ref[...])                                            # (2N, 2D) f32
        mu = jnp.mean(y, axis=-1, keepdims=True)                       # LayerNorm(2D), eps=1e-5
        var = jnp.mean(jnp.square(y - mu), axis=-1, keepdims=True)
        y = (y - mu) * lax.rsqrt(var + 1e-5) * ln_g_ref[...] + ln_b_ref[...]
        y = 0.5 * y * (1.0 + lax.erf(y * (1.0 / math.sqrt(2.0))))      # exact GELU (PyTorch default)
        out = (jnp.dot(y.astype(bf16), w2_ref[...],
                       preferred_element_type=jnp.float32) + b2_ref[...])
        o_ref[0] = (x01_f32 + out).astype(o_ref.dtype)


# ---------------------------------------------------------------------------
# Wrapper
# ---------------------------------------------------------------------------
def _pick_vmem_limit():
    # Conservative default = v7x physical VMEM per core (64 MiB) -> 48 MiB scoped;
    # when get_tpu_info works (e.g. 128 MiB on v5e/v6e) allow up to ~96-100 MiB.
    cap = 64 * 1024 * 1024
    try:
        cap = int(pltpu.get_tpu_info().vmem_capacity_bytes)
    except Exception:
        pass
    return min((cap * 3) // 4, 100 * 1024 * 1024)


def _const_spec(shape, use_buffered):
    nd = len(shape)

    def idx(b, h, _nd=nd):
        return (0,) * _nd

    # Constant block index across the whole grid: DMA'd once; Buffered(1) avoids the
    # default double buffer (frees VMEM for the attention / FFN tiles).
    if use_buffered and hasattr(pl, "Buffered"):
        return pl.BlockSpec(shape, idx, pipeline_mode=pl.Buffered(1))
    return pl.BlockSpec(shape, idx)


def _head_spec(shape):
    nd = len(shape)

    def idx(b, h, _nd=nd):
        return (h,) + (0,) * (_nd - 1)

    return pl.BlockSpec((1,) + tuple(shape[1:]), idx)


def cross_block(x0, x1, params, heads):
    B, N, D = x0.shape
    (wqk, bqk, wv, bv, wout, bout, w1, b1, ln_g, ln_b, w2, b2) = params
    inner = wqk.shape[1]
    dh = inner // heads
    scale = dh ** (-0.25)          # CrossBlock scales both qk0 and qk1 by sqrt(dh**-0.5)

    bf16, f32 = jnp.bfloat16, jnp.float32

    # Per-head weight slices with the head axis leading (selected by the BlockSpec
    # index_map, so no in-kernel head split/merge transposes). qk scale folded in.
    # NOTE: for MXU efficiency on v6e/v7x, D / 2D should ideally be multiples of 256
    # (128 on v5e); toy test shapes below are intentionally small.
    wqk_h = (wqk.astype(f32) * scale).reshape(D, heads, dh).transpose(1, 0, 2).astype(bf16)  # (H,D,Dh)
    bqk_h = (bqk.astype(f32) * scale).reshape(heads, dh)[:, None, :]                         # (H,1,Dh)
    wv_h = wv.astype(f32).reshape(D, heads, dh).transpose(1, 0, 2).astype(bf16)              # (H,D,Dh)
    bv_h = bv.astype(f32).reshape(heads, dh)[:, None, :]                                     # (H,1,Dh)
    wout_h = wout.astype(f32).reshape(heads, dh, D).astype(bf16)                             # (H,Dh,D)
    bout_f = bout.astype(f32).reshape(1, D)
    w1a_b = w1[:D, :].astype(bf16)             # FFN W1 split: x-part  (D, 2D)
    w1b_b = w1[D:, :].astype(bf16)             # FFN W1 split: m-part  (D, 2D)
    b1_f = b1.astype(f32).reshape(1, 2 * D)
    ln_g_f = ln_g.astype(f32).reshape(1, 2 * D)
    ln_b_f = ln_b.astype(f32).reshape(1, 2 * D)
    w2_b = w2.astype(bf16)                     # (2D, D)
    b2_f = b2.astype(f32).reshape(1, D)

    # Stack the two token streams: one matmul per shared weight per step and a single
    # lane-dense (2N, D) store per batch element; split back in the wrapper.
    x01 = jnp.concatenate([x0, x1], axis=1).astype(f32)    # (B, 2N, D)

    args = (x01,
            wqk_h, bqk_h, wv_h, bv_h, wout_h, bout_f,
            w1a_b, w1b_b, b1_f, ln_g_f, ln_b_f, w2_b, b2_f)

    def run(use_buffered):
        tok_spec = pl.BlockSpec((1, 2 * N, D), lambda b, h: (b, 0, 0))
        in_specs = [
            tok_spec,
            _head_spec(wqk_h.shape), _head_spec(bqk_h.shape),
            _head_spec(wv_h.shape), _head_spec(bv_h.shape),
            _head_spec(wout_h.shape),
            _const_spec(bout_f.shape, use_buffered),
            _const_spec(w1a_b.shape, use_buffered),
            _const_spec(w1b_b.shape, use_buffered),
            _const_spec(b1_f.shape, use_buffered),
            _const_spec(ln_g_f.shape, use_buffered),
            _const_spec(ln_b_f.shape, use_buffered),
            _const_spec(w2_b.shape, use_buffered),
            _const_spec(b2_f.shape, use_buffered),
        ]
        kernel = functools.partial(cross_block_kernel, n_tok=N)
        return pl.pallas_call(
            kernel,
            out_shape=jax.ShapeDtypeStruct((B, 2 * N, D), x0.dtype),
            grid_spec=pltpu.PrefetchScalarGridSpec(
                num_scalar_prefetch=0,
                grid=(B, heads),            # batch "parallel" (fills both v7x TCs for
                                            # B >= 2); heads = reduction over acc_ref
                in_specs=in_specs,
                out_specs=tok_spec,
                scratch_shapes=[pltpu.VMEM((2 * N, D), jnp.float32)],
            ),
            compiler_params=pltpu.CompilerParams(
                dimension_semantics=("parallel", "arbitrary"),
                vmem_limit_bytes=_pick_vmem_limit(),
            ),
        )(*args)

    try:
        out01 = run(use_buffered=True)
    except Exception:
        # pl.Buffered(1) not accepted by this JAX build -> default double buffering.
        out01 = run(use_buffered=False)

    return out01[:, :N, :], out01[:, N:, :]


# ---------------------------------------------------------------------------
# Pure-JAX reference (mirrors the PyTorch forward exactly, all f32)
# ---------------------------------------------------------------------------
def cross_block_ref(x0, x1, params, heads):
    (wqk, bqk, wv, bv, wout, bout, w1, b1, ln_g, ln_b, w2, b2) = params
    B, N, D = x0.shape
    inner = wqk.shape[1]
    dh = inner // heads
    s = dh ** (-0.25)

    def lin(x, w, b):
        return x @ w + b

    def split(t):
        return jnp.swapaxes(t.reshape(B, N, heads, dh), 1, 2)  # (B,H,N,Dh)

    qk0, qk1 = lin(x0, wqk, bqk), lin(x1, wqk, bqk)
    v0, v1 = lin(x0, wv, bv), lin(x1, wv, bv)
    qk0, qk1, v0, v1 = map(split, (qk0, qk1, v0, v1))
    qk0, qk1 = qk0 * s, qk1 * s
    sim = jnp.einsum('bhid,bhjd->bhij', qk0, qk1)
    attn01 = jax.nn.softmax(sim, axis=-1)
    attn10 = jax.nn.softmax(jnp.swapaxes(sim, -1, -2), axis=-1)
    m0 = jnp.einsum('bhij,bhjd->bhid', attn01, v1)
    m1 = jnp.einsum('bhji,bhjd->bhid', jnp.swapaxes(attn10, -1, -2), v0)

    def merge(t):
        return jnp.swapaxes(t, 1, 2).reshape(B, N, inner)

    m0 = lin(merge(m0), wout, bout)
    m1 = lin(merge(m1), wout, bout)

    def ffn(x, m):
        y = lin(jnp.concatenate([x, m], -1), w1, b1)
        mu = jnp.mean(y, -1, keepdims=True)
        var = jnp.mean((y - mu) ** 2, -1, keepdims=True)
        y = (y - mu) * lax.rsqrt(var + 1e-5) * ln_g + ln_b
        y = 0.5 * y * (1.0 + lax.erf(y / math.sqrt(2.0)))
        return lin(y, w2, b2)

    return x0 + ffn(x0, m0), x1 + ffn(x1, m1)


# ---------------------------------------------------------------------------
# Deterministic parameter init + run
# ---------------------------------------------------------------------------
def init_params(key, embed_dim, heads, dtype=jnp.float32):
    inner = (embed_dim // heads) * heads
    ks = jax.random.split(key, 12)

    def w(k, shape, scale):
        return (jax.random.normal(k, shape, dtype) * scale).astype(dtype)

    sc_in = 1.0 / math.sqrt(embed_dim)
    sc_2d = 1.0 / math.sqrt(2 * embed_dim)
    params = (
        w(ks[0], (embed_dim, inner), sc_in),                     # to_qk.weight (in,out)
        w(ks[1], (1, inner), 0.02),                              # to_qk.bias
        w(ks[2], (embed_dim, inner), sc_in),                     # to_v.weight
        w(ks[3], (1, inner), 0.02),                              # to_v.bias
        w(ks[4], (inner, embed_dim), sc_in),                     # to_out.weight
        w(ks[5], (1, embed_dim), 0.02),                          # to_out.bias
        w(ks[6], (2 * embed_dim, 2 * embed_dim), sc_2d),         # ffn[0].weight
        w(ks[7], (1, 2 * embed_dim), 0.02),                      # ffn[0].bias
        jnp.ones((1, 2 * embed_dim), dtype),                     # ffn[1] LayerNorm gamma
        jnp.zeros((1, 2 * embed_dim), dtype),                    # ffn[1] LayerNorm beta
        w(ks[10], (2 * embed_dim, embed_dim), sc_2d),            # ffn[3].weight
        w(ks[11], (1, embed_dim), 0.02),                         # ffn[3].bias
    )
    return params


if __name__ == "__main__":
    B, N, D, H = 2, 16, 32, 4

    key = jax.random.PRNGKey(0)
    kx0, kx1, kp = jax.random.split(key, 3)
    x0 = jax.random.normal(kx0, (B, N, D), jnp.float32)
    x1 = jax.random.normal(kx1, (B, N, D), jnp.float32)
    params = init_params(kp, D, H)

    out0, out1 = cross_block(x0, x1, params, H)
    jax.block_until_ready((out0, out1))

    ref0, ref1 = cross_block_ref(x0, x1, params, H)
    # bf16 MXU operands (f32 accumulation) + approx reciprocal in the softmax
    # normalization -> tolerance tightened vs. the previous 1e-1 but still bf16-aware.
    assert jnp.allclose(out0, ref0, atol=5e-2, rtol=5e-2), "x0 mismatch"
    assert jnp.allclose(out1, ref1, atol=5e-2, rtol=5e-2), "x1 mismatch"

    print("KERNEL_OK")
</pallas_src>

<mosaic_0001>
module attributes {stable_mosaic.version = 11 : i64} {
  func.func @cross_block_kernel(%arg0: i32, %arg1: i32, %arg2: memref<1x32x32xf32, #tpu.memory_space<vmem>>, %arg3: memref<1x32x8xbf16, #tpu.memory_space<vmem>>, %arg4: memref<1x1x8xf32, #tpu.memory_space<vmem>>, %arg5: memref<1x32x8xbf16, #tpu.memory_space<vmem>>, %arg6: memref<1x1x8xf32, #tpu.memory_space<vmem>>, %arg7: memref<1x8x32xbf16, #tpu.memory_space<vmem>>, %arg8: memref<1x32xf32, #tpu.memory_space<vmem>>, %arg9: memref<32x64xbf16, #tpu.memory_space<vmem>>, %arg10: memref<32x64xbf16, #tpu.memory_space<vmem>>, %arg11: memref<1x64xf32, #tpu.memory_space<vmem>>, %arg12: memref<1x64xf32, #tpu.memory_space<vmem>>, %arg13: memref<1x64xf32, #tpu.memory_space<vmem>>, %arg14: memref<64x32xbf16, #tpu.memory_space<vmem>>, %arg15: memref<1x32xf32, #tpu.memory_space<vmem>>, %arg16: memref<1x32x32xf32, #tpu.memory_space<vmem>>, %arg17: memref<32x32xf32, #tpu.memory_space<vmem>>) attributes {dimension_semantics = [#tpu.dimension_semantics<parallel>, #tpu.dimension_semantics<arbitrary>], iteration_bounds = array<i64: 2, 4>, scalar_prefetch = 0 : i64, scratch_operands = 1 : i64, tpu.core_type = #tpu.core_type<tc>, window_params = [{transform_indices = @transform_0, window_bounds = array<i64: 1, 32, 32>}, {transform_indices = @transform_1, window_bounds = array<i64: 1, 32, 8>}, {transform_indices = @transform_2, window_bounds = array<i64: 1, 1, 8>}, {transform_indices = @transform_3, window_bounds = array<i64: 1, 32, 8>}, {transform_indices = @transform_4, window_bounds = array<i64: 1, 1, 8>}, {transform_indices = @transform_5, window_bounds = array<i64: 1, 8, 32>}, {pipeline_mode = #tpu.pipeline_mode<synchronous>, transform_indices = @transform_6, window_bounds = array<i64: 1, 32>}, {pipeline_mode = #tpu.pipeline_mode<synchronous>, transform_indices = @transform_7, window_bounds = array<i64: 32, 64>}, {pipeline_mode = #tpu.pipeline_mode<synchronous>, transform_indices = @transform_8, window_bounds = array<i64: 32, 64>}, {pipeline_mode = #tpu.pipeline_mode<synchronous>, transform_indices = @transform_9, window_bounds = array<i64: 1, 64>}, {pipeline_mode = #tpu.pipeline_mode<synchronous>, transform_indices = @transform_10, window_bounds = array<i64: 1, 64>}, {pipeline_mode = #tpu.pipeline_mode<synchronous>, transform_indices = @transform_11, window_bounds = array<i64: 1, 64>}, {pipeline_mode = #tpu.pipeline_mode<synchronous>, transform_indices = @transform_12, window_bounds = array<i64: 64, 32>}, {pipeline_mode = #tpu.pipeline_mode<synchronous>, transform_indices = @transform_13, window_bounds = array<i64: 1, 32>}, {transform_indices = @transform_14, window_bounds = array<i64: 1, 32, 32>}]} {
    %c0 = arith.constant 0 : index
    %c0_0 = arith.constant 0 : index
    %c0_1 = arith.constant 0 : index
    %0 = vector.load %arg2[%c0, %c0_0, %c0_1] : memref<1x32x32xf32, #tpu.memory_space<vmem>>, vector<1x32x32xf32>
    %1 = vector.shape_cast %0 : vector<1x32x32xf32> to vector<32x32xf32>
    %2 = arith.truncf %1 : vector<32x32xf32> to vector<32x32xbf16>
    %c0_2 = arith.constant 0 : index
    %c0_3 = arith.constant 0 : index
    %c0_4 = arith.constant 0 : index
    %3 = vector.load %arg3[%c0_2, %c0_3, %c0_4] : memref<1x32x8xbf16, #tpu.memory_space<vmem>>, vector<1x32x8xbf16>
    %4 = vector.shape_cast %3 : vector<1x32x8xbf16> to vector<32x8xbf16>
    %cst = arith.constant dense<0.000000e+00> : vector<32x8xf32>
    %5 = tpu.matmul %2, %4, %cst {dimension_numbers = #tpu.dot_dimension_numbers<[1], [0], [0], [1], [0, 0, 1, 1], [], []>} : vector<32x32xbf16>, vector<32x8xbf16>, vector<32x8xf32> -> vector<32x8xf32>
    %c0_5 = arith.constant 0 : index
    %c0_6 = arith.constant 0 : index
    %c0_7 = arith.constant 0 : index
    %6 = vector.load %arg4[%c0_5, %c0_6, %c0_7] : memref<1x1x8xf32, #tpu.memory_space<vmem>>, vector<1x1x8xf32>
    %7 = vector.shape_cast %6 : vector<1x1x8xf32> to vector<1x8xf32>
    %8 = vector.broadcast %7 : vector<1x8xf32> to vector<32x8xf32>
    %9 = arith.addf %5, %8 : vector<32x8xf32>
    %c0_8 = arith.constant 0 : index
    %c0_9 = arith.constant 0 : index
    %c0_10 = arith.constant 0 : index
    %10 = vector.load %arg5[%c0_8, %c0_9, %c0_10] : memref<1x32x8xbf16, #tpu.memory_space<vmem>>, vector<1x32x8xbf16>
    %11 = vector.shape_cast %10 : vector<1x32x8xbf16> to vector<32x8xbf16>
    %cst_11 = arith.constant dense<0.000000e+00> : vector<32x8xf32>
    %12 = tpu.matmul %2, %11, %cst_11 {dimension_numbers = #tpu.dot_dimension_numbers<[1], [0], [0], [1], [0, 0, 1, 1], [], []>} : vector<32x32xbf16>, vector<32x8xbf16>, vector<32x8xf32> -> vector<32x8xf32>
    %c0_12 = arith.constant 0 : index
    %c0_13 = arith.constant 0 : index
    %c0_14 = arith.constant 0 : index
    %13 = vector.load %arg6[%c0_12, %c0_13, %c0_14] : memref<1x1x8xf32, #tpu.memory_space<vmem>>, vector<1x1x8xf32>
    %14 = vector.shape_cast %13 : vector<1x1x8xf32> to vector<1x8xf32>
    %15 = vector.broadcast %14 : vector<1x8xf32> to vector<32x8xf32>
    %16 = arith.addf %12, %15 : vector<32x8xf32>
    %17 = vector.extract_strided_slice %9 {offsets = [0, 0], sizes = [16, 8], strides = [1, 1]} : vector<32x8xf32> to vector<16x8xf32>
    %18 = arith.truncf %17 : vector<16x8xf32> to vector<16x8xbf16>
    %19 = vector.extract_strided_slice %9 {offsets = [16, 0], sizes = [16, 8], strides = [1, 1]} : vector<32x8xf32> to vector<16x8xf32>
    %20 = arith.truncf %19 : vector<16x8xf32> to vector<16x8xbf16>
    %21 = vector.extract_strided_slice %16 {offsets = [0, 0], sizes = [16, 8], strides = [1, 1]} : vector<32x8xf32> to vector<16x8xf32>
    %22 = arith.truncf %21 : vector<16x8xf32> to vector<16x8xbf16>
    %23 = vector.extract_strided_slice %16 {offsets = [16, 0], sizes = [16, 8], strides = [1, 1]} : vector<32x8xf32> to vector<16x8xf32>
    %24 = arith.truncf %23 : vector<16x8xf32> to vector<16x8xbf16>
    %cst_15 = arith.constant dense<0.000000e+00> : vector<16x16xf32>
    %25 = tpu.matmul %18, %20, %cst_15 {dimension_numbers = #tpu.dot_dimension_numbers<[1], [1], [0], [0], [0, 0, 1, 0], [], []>} : vector<16x8xbf16>, vector<16x8xbf16>, vector<16x16xf32> -> vector<16x16xf32>
    %cst_16 = arith.constant dense<0xFF800000> : vector<16xf32>
    %26 = vector.multi_reduction <maximumf>, %25, %cst_16 [1] : vector<16x16xf32> to vector<16xf32>
    %27 = vector.shape_cast %26 : vector<16xf32> to vector<16x1xf32>
    %cst_17 = arith.constant dense<0xFF800000> : vector<1xf32>
    %28 = vector.multi_reduction <maximumf>, %27, %cst_17 [0] : vector<16x1xf32> to vector<1xf32>
    %29 = vector.shape_cast %28 : vector<1xf32> to vector<1x1xf32>
    %30 = vector.broadcast %27 : vector<16x1xf32> to vector<16x16xf32>
    %31 = arith.subf %25, %30 : vector<16x16xf32>
    %32 = math.exp %31 : vector<16x16xf32>
    %cst_18 = arith.constant dense<0.000000e+00> : vector<16xf32>
    %33 = vector.multi_reduction <add>, %32, %cst_18 [1] : vector<16x16xf32> to vector<16xf32>
    %34 = vector.shape_cast %33 : vector<16xf32> to vector<16x1xf32>
    %35 = tpu.reciprocal %34 {approx = true} : vector<16x1xf32> -> vector<16x1xf32>
    %36 = vector.broadcast %35 : vector<16x1xf32> to vector<16x16xf32>
    %37 = arith.mulf %32, %36 : vector<16x16xf32>
    %38 = arith.truncf %37 : vector<16x16xf32> to vector<16x16xbf16>
    %39 = vector.broadcast %29 : vector<1x1xf32> to vector<16x1xf32>
    %40 = arith.subf %27, %39 : vector<16x1xf32>
    %41 = math.exp %40 : vector<16x1xf32>
    %42 = vector.broadcast %41 : vector<16x1xf32> to vector<16x16xf32>
    %43 = arith.mulf %32, %42 : vector<16x16xf32>
    %cst_19 = arith.constant dense<0.000000e+00> : vector<16xf32>
    %44 = vector.multi_reduction <add>, %43, %cst_19 [0] : vector<16x16xf32> to vector<16xf32>
    %45 = vector.shape_cast %44 : vector<16xf32> to vector<1x16xf32>
    %cst_20 = arith.constant 1.000000e-30 : f32
    %46 = vector.broadcast %cst_20 : f32 to vector<1x16xf32>
    %47 = arith.maximumf %45, %46 : vector<1x16xf32>
    %48 = tpu.reciprocal %47 {approx = true} : vector<1x16xf32> -> vector<1x16xf32>
    %49 = vector.broadcast %48 : vector<1x16xf32> to vector<16x16xf32>
    %50 = arith.mulf %43, %49 : vector<16x16xf32>
    %51 = arith.truncf %50 : vector<16x16xf32> to vector<16x16xbf16>
    %cst_21 = arith.constant dense<0.000000e+00> : vector<16x8xf32>
    %52 = tpu.matmul %38, %24, %cst_21 {dimension_numbers = #tpu.dot_dimension_numbers<[1], [0], [0], [1], [0, 0, 1, 1], [], []>} : vector<16x16xbf16>, vector<16x8xbf16>, vector<16x8xf32> -> vector<16x8xf32>
    %cst_22 = arith.constant dense<0.000000e+00> : vector<16x8xf32>
    %53 = tpu.matmul %51, %22, %cst_22 {dimension_numbers = #tpu.dot_dimension_numbers<[0], [0], [1], [1], [0, 1, 1, 1], [], []>} : vector<16x16xbf16>, vector<16x8xbf16>, vector<16x8xf32> -> vector<16x8xf32>
    %54 = arith.truncf %52 : vector<16x8xf32> to vector<16x8xbf16>
    %55 = arith.truncf %53 : vector<16x8xf32> to vector<16x8xbf16>
    %56 = tpu.concatenate %54, %55 in 0 : vector<16x8xbf16>, vector<16x8xbf16> -> vector<32x8xbf16>
    %c0_i32 = arith.constant 0 : i32
    %57 = arith.cmpi eq, %arg1, %c0_i32 : i32
    %58 = arith.extui %57 : i1 to i32
    %c0_i32_23 = arith.constant 0 : i32
    %59 = arith.cmpi ne, %58, %c0_i32_23 : i32
    scf.if %59 {
      %c0_33 = arith.constant 0 : index
      %c0_34 = arith.constant 0 : index
      %69 = vector.load %arg8[%c0_33, %c0_34] : memref<1x32xf32, #tpu.memory_space<vmem>>, vector<1x32xf32>
      %70 = vector.shape_cast %69 : vector<1x32xf32> to vector<1x32xf32>
      %71 = vector.broadcast %70 : vector<1x32xf32> to vector<32x32xf32>
      %c0_35 = arith.constant 0 : index
      %c0_36 = arith.constant 0 : index
      %72 = vector.load %arg17[%c0_35, %c0_36] : memref<32x32xf32, #tpu.memory_space<vmem>>, vector<32x32xf32>
      tpu.vector_store %arg17[%c0_35, %c0_36], %71 {strides = array<i32>} : memref<32x32xf32, #tpu.memory_space<vmem>>, vector<32x32xf32>,
    } else {
    }
    %c0_24 = arith.constant 0 : index
    %c0_25 = arith.constant 0 : index
    %60 = vector.load %arg17[%c0_24, %c0_25] : memref<32x32xf32, #tpu.memory_space<vmem>>, vector<32x32xf32>
    %c0_26 = arith.constant 0 : index
    %c0_27 = arith.constant 0 : index
    %c0_28 = arith.constant 0 : index
    %61 = vector.load %arg7[%c0_26, %c0_27, %c0_28] : memref<1x8x32xbf16, #tpu.memory_space<vmem>>, vector<1x8x32xbf16>
    %62 = vector.shape_cast %61 : vector<1x8x32xbf16> to vector<8x32xbf16>
    %cst_29 = arith.constant dense<0.000000e+00> : vector<32x32xf32>
    %63 = tpu.matmul %56, %62, %cst_29 {dimension_numbers = #tpu.dot_dimension_numbers<[1], [0], [0], [1], [0, 0, 1, 1], [], []>} : vector<32x8xbf16>, vector<8x32xbf16>, vector<32x32xf32> -> vector<32x32xf32>
    %64 = arith.addf %60, %63 : vector<32x32xf32>
    %c0_30 = arith.constant 0 : index
    %c0_31 = arith.constant 0 : index
    %65 = vector.load %arg17[%c0_30, %c0_31] : memref<32x32xf32, #tpu.memory_space<vmem>>, vector<32x32xf32>
    tpu.vector_store %arg17[%c0_30, %c0_31], %64 {strides = array<i32>} : memref<32x32xf32, #tpu.memory_space<vmem>>, vector<32x32xf32>,
    %c3_i32 = arith.constant 3 : i32
    %66 = arith.cmpi eq, %arg1, %c3_i32 : i32
    %67 = arith.extui %66 : i1 to i32
    %c0_i32_32 = arith.constant 0 : i32
    %68 = arith.cmpi ne, %67, %c0_i32_32 : i32
    scf.if %68 {
      %c0_33 = arith.constant 0 : index
      %c0_34 = arith.constant 0 : index
      %69 = vector.load %arg17[%c0_33, %c0_34] : memref<32x32xf32, #tpu.memory_space<vmem>>, vector<32x32xf32>
      %c0_35 = arith.constant 0 : index
      %c0_36 = arith.constant 0 : index
      %70 = vector.load %arg9[%c0_35, %c0_36] : memref<32x64xbf16, #tpu.memory_space<vmem>>, vector<32x64xbf16>
      %cst_37 = arith.constant dense<0.000000e+00> : vector<32x64xf32>
      %71 = tpu.matmul %2, %70, %cst_37 {dimension_numbers = #tpu.dot_dimension_numbers<[1], [0], [0], [1], [0, 0, 1, 1], [], []>} : vector<32x32xbf16>, vector<32x64xbf16>, vector<32x64xf32> -> vector<32x64xf32>
      %72 = arith.truncf %69 : vector<32x32xf32> to vector<32x32xbf16>
      %c0_38 = arith.constant 0 : index
      %c0_39 = arith.constant 0 : index
      %73 = vector.load %arg10[%c0_38, %c0_39] : memref<32x64xbf16, #tpu.memory_space<vmem>>, vector<32x64xbf16>
      %cst_40 = arith.constant dense<0.000000e+00> : vector<32x64xf32>
      %74 = tpu.matmul %72, %73, %cst_40 {dimension_numbers = #tpu.dot_dimension_numbers<[1], [0], [0], [1], [0, 0, 1, 1], [], []>} : vector<32x32xbf16>, vector<32x64xbf16>, vector<32x64xf32> -> vector<32x64xf32>
      %75 = arith.addf %71, %74 : vector<32x64xf32>
      %c0_41 = arith.constant 0 : index
      %c0_42 = arith.constant 0 : index
      %76 = vector.load %arg11[%c0_41, %c0_42] : memref<1x64xf32, #tpu.memory_space<vmem>>, vector<1x64xf32>
      %77 = vector.broadcast %76 : vector<1x64xf32> to vector<32x64xf32>
      %78 = arith.addf %75, %77 : vector<32x64xf32>
      %cst_43 = arith.constant dense<0.000000e+00> : vector<32xf32>
      %79 = vector.multi_reduction <add>, %78, %cst_43 [1] : vector<32x64xf32> to vector<32xf32>
      %80 = vector.shape_cast %79 : vector<32xf32> to vector<32x1xf32>
      %cst_44 = arith.constant 6.400000e+01 : f32
      %81 = vector.broadcast %cst_44 : f32 to vector<32x1xf32>
      %82 = arith.divf %80, %81 : vector<32x1xf32>
      %83 = vector.broadcast %82 : vector<32x1xf32> to vector<32x64xf32>
      %84 = arith.subf %78, %83 : vector<32x64xf32>
      %85 = arith.mulf %84, %84 : vector<32x64xf32>
      %cst_45 = arith.constant dense<0.000000e+00> : vector<32xf32>
      %86 = vector.multi_reduction <add>, %85, %cst_45 [1] : vector<32x64xf32> to vector<32xf32>
      %87 = vector.shape_cast %86 : vector<32xf32> to vector<32x1xf32>
      %cst_46 = arith.constant 6.400000e+01 : f32
      %88 = vector.broadcast %cst_46 : f32 to vector<32x1xf32>
      %89 = arith.divf %87, %88 : vector<32x1xf32>
      %90 = vector.broadcast %82 : vector<32x1xf32> to vector<32x64xf32>
      %91 = arith.subf %78, %90 : vector<32x64xf32>
      %cst_47 = arith.constant 9.99999974E-6 : f32
      %92 = vector.broadcast %cst_47 : f32 to vector<32x1xf32>
      %93 = arith.addf %89, %92 : vector<32x1xf32>
      %94 = math.rsqrt %93 : vector<32x1xf32>
      %95 = vector.broadcast %94 : vector<32x1xf32> to vector<32x64xf32>
      %96 = arith.mulf %91, %95 : vector<32x64xf32>
      %c0_48 = arith.constant 0 : index
      %c0_49 = arith.constant 0 : index
      %97 = vector.load %arg12[%c0_48, %c0_49] : memref<1x64xf32, #tpu.memory_space<vmem>>, vector<1x64xf32>
      %98 = vector.broadcast %97 : vector<1x64xf32> to vector<32x64xf32>
      %99 = arith.mulf %96, %98 : vector<32x64xf32>
      %c0_50 = arith.constant 0 : index
      %c0_51 = arith.constant 0 : index
      %100 = vector.load %arg13[%c0_50, %c0_51] : memref<1x64xf32, #tpu.memory_space<vmem>>, vector<1x64xf32>
      %101 = vector.broadcast %100 : vector<1x64xf32> to vector<32x64xf32>
      %102 = arith.addf %99, %101 : vector<32x64xf32>
      %cst_52 = arith.constant 5.000000e-01 : f32
      %103 = vector.broadcast %cst_52 : f32 to vector<32x64xf32>
      %104 = arith.mulf %103, %102 : vector<32x64xf32>
      %cst_53 = arith.constant 0.707106769 : f32
      %105 = vector.broadcast %cst_53 : f32 to vector<32x64xf32>
      %106 = arith.mulf %102, %105 : vector<32x64xf32>
      %107 = math.erf %106 : vector<32x64xf32>
      %cst_54 = arith.constant 1.000000e+00 : f32
      %108 = vector.broadcast %cst_54 : f32 to vector<32x64xf32>
      %109 = arith.addf %108, %107 : vector<32x64xf32>
      %110 = arith.mulf %104, %109 : vector<32x64xf32>
      %111 = arith.truncf %110 : vector<32x64xf32> to vector<32x64xbf16>
      %c0_55 = arith.constant 0 : index
      %c0_56 = arith.constant 0 : index
      %112 = vector.load %arg14[%c0_55, %c0_56] : memref<64x32xbf16, #tpu.memory_space<vmem>>, vector<64x32xbf16>
      %cst_57 = arith.constant dense<0.000000e+00> : vector<32x32xf32>
      %113 = tpu.matmul %111, %112, %cst_57 {dimension_numbers = #tpu.dot_dimension_numbers<[1], [0], [0], [1], [0, 0, 1, 1], [], []>} : vector<32x64xbf16>, vector<64x32xbf16>, vector<32x32xf32> -> vector<32x32xf32>
      %c0_58 = arith.constant 0 : index
      %c0_59 = arith.constant 0 : index
      %114 = vector.load %arg15[%c0_58, %c0_59] : memref<1x32xf32, #tpu.memory_space<vmem>>, vector<1x32xf32>
      %115 = vector.broadcast %114 : vector<1x32xf32> to vector<32x32xf32>
      %116 = arith.addf %113, %115 : vector<32x32xf32>
      %117 = arith.addf %1, %116 : vector<32x32xf32>
      %c0_60 = arith.constant 0 : index
      %c0_61 = arith.constant 0 : index
      %c0_62 = arith.constant 0 : index
      %118 = vector.load %arg16[%c0_60, %c0_61, %c0_62] : memref<1x32x32xf32, #tpu.memory_space<vmem>>, vector<1x32x32xf32>
      %119 = vector.shape_cast %118 : vector<1x32x32xf32> to vector<32x32xf32>
      %120 = vector.shape_cast %117 : vector<32x32xf32> to vector<1x32x32xf32>
      tpu.vector_store %arg16[%c0_60, %c0_61, %c0_62], %120 {strides = array<i32>} : memref<1x32x32xf32, #tpu.memory_space<vmem>>, vector<1x32x32xf32>,
    } else {
    }
    return
  }
  func.func @transform_0(%arg0: i32, %arg1: i32) -> (i32, i32, i32) {
    %c0_i32 = arith.constant 0 : i32
    %c0_i32_0 = arith.constant 0 : i32
    %c0_i32_1 = arith.constant 0 : i32
    return %arg0, %c0_i32, %c0_i32_0 : i32, i32, i32
  }
  func.func @transform_1(%arg0: i32, %arg1: i32) -> (i32, i32, i32) {
    %c0_i32 = arith.constant 0 : i32
    %c0_i32_0 = arith.constant 0 : i32
    %c0_i32_1 = arith.constant 0 : i32
    return %arg1, %c0_i32, %c0_i32_0 : i32, i32, i32
  }
  func.func @transform_2(%arg0: i32, %arg1: i32) -> (i32, i32, i32) {
    %c0_i32 = arith.constant 0 : i32
    %c0_i32_0 = arith.constant 0 : i32
    %c0_i32_1 = arith.constant 0 : i32
    return %arg1, %c0_i32, %c0_i32_0 : i32, i32, i32
  }
  func.func @transform_3(%arg0: i32, %arg1: i32) -> (i32, i32, i32) {
    %c0_i32 = arith.constant 0 : i32
    %c0_i32_0 = arith.constant 0 : i32
    %c0_i32_1 = arith.constant 0 : i32
    return %arg1, %c0_i32, %c0_i32_0 : i32, i32, i32
  }
  func.func @transform_4(%arg0: i32, %arg1: i32) -> (i32, i32, i32) {
    %c0_i32 = arith.constant 0 : i32
    %c0_i32_0 = arith.constant 0 : i32
    %c0_i32_1 = arith.constant 0 : i32
    return %arg1, %c0_i32, %c0_i32_0 : i32, i32, i32
  }
  func.func @transform_5(%arg0: i32, %arg1: i32) -> (i32, i32, i32) {
    %c0_i32 = arith.constant 0 : i32
    %c0_i32_0 = arith.constant 0 : i32
    %c0_i32_1 = arith.constant 0 : i32
    return %arg1, %c0_i32, %c0_i32_0 : i32, i32, i32
  }
  func.func @transform_6(%arg0: i32, %arg1: i32) -> (i32, i32) {
    %c0_i32 = arith.constant 0 : i32
    %c0_i32_0 = arith.constant 0 : i32
    %c0_i32_1 = arith.constant 0 : i32
    return %c0_i32, %c0_i32_0 : i32, i32
  }
  func.func @transform_7(%arg0: i32, %arg1: i32) -> (i32, i32) {
    %c0_i32 = arith.constant 0 : i32
    %c0_i32_0 = arith.constant 0 : i32
    %c0_i32_1 = arith.constant 0 : i32
    return %c0_i32, %c0_i32_0 : i32, i32
  }
  func.func @transform_8(%arg0: i32, %arg1: i32) -> (i32, i32) {
    %c0_i32 = arith.constant 0 : i32
    %c0_i32_0 = arith.constant 0 : i32
    %c0_i32_1 = arith.constant 0 : i32
    return %c0_i32, %c0_i32_0 : i32, i32
  }
  func.func @transform_9(%arg0: i32, %arg1: i32) -> (i32, i32) {
    %c0_i32 = arith.constant 0 : i32
    %c0_i32_0 = arith.constant 0 : i32
    %c0_i32_1 = arith.constant 0 : i32
    return %c0_i32, %c0_i32_0 : i32, i32
  }
  func.func @transform_10(%arg0: i32, %arg1: i32) -> (i32, i32) {
    %c0_i32 = arith.constant 0 : i32
    %c0_i32_0 = arith.constant 0 : i32
    %c0_i32_1 = arith.constant 0 : i32
    return %c0_i32, %c0_i32_0 : i32, i32
  }
  func.func @transform_11(%arg0: i32, %arg1: i32) -> (i32, i32) {
    %c0_i32 = arith.constant 0 : i32
    %c0_i32_0 = arith.constant 0 : i32
    %c0_i32_1 = arith.constant 0 : i32
    return %c0_i32, %c0_i32_0 : i32, i32
  }
  func.func @transform_12(%arg0: i32, %arg1: i32) -> (i32, i32) {
    %c0_i32 = arith.constant 0 : i32
    %c0_i32_0 = arith.constant 0 : i32
    %c0_i32_1 = arith.constant 0 : i32
    return %c0_i32, %c0_i32_0 : i32, i32
  }
  func.func @transform_13(%arg0: i32, %arg1: i32) -> (i32, i32) {
    %c0_i32 = arith.constant 0 : i32
    %c0_i32_0 = arith.constant 0 : i32
    %c0_i32_1 = arith.constant 0 : i32
    return %c0_i32, %c0_i32_0 : i32, i32
  }
  func.func @transform_14(%arg0: i32, %arg1: i32) -> (i32, i32, i32) {
    %c0_i32 = arith.constant 0 : i32
    %c0_i32_0 = arith.constant 0 : i32
    %c0_i32_1 = arith.constant 0 : i32
    return %arg0, %c0_i32, %c0_i32_0 : i32, i32, i32
  }
}

module attributes {stable_mosaic.version = 11 : i64} {
  func.func @cross_block_kernel(%arg0: i32, %arg1: i32, %arg2: memref<1x32x32xf32, #tpu.memory_space<vmem>>, %arg3: memref<1x32x8xbf16, #tpu.memory_space<vmem>>, %arg4: memref<1x1x8xf32, #tpu.memory_space<vmem>>, %arg5: memref<1x32x8xbf16, #tpu.memory_space<vmem>>, %arg6: memref<1x1x8xf32, #tpu.memory_space<vmem>>, %arg7: memref<1x8x32xbf16, #tpu.memory_space<vmem>>, %arg8: memref<1x32xf32, #tpu.memory_space<vmem>>, %arg9: memref<32x64xbf16, #tpu.memory_space<vmem>>, %arg10: memref<32x64xbf16, #tpu.memory_space<vmem>>, %arg11: memref<1x64xf32, #tpu.memory_space<vmem>>, %arg12: memref<1x64xf32, #tpu.memory_space<vmem>>, %arg13: memref<1x64xf32, #tpu.memory_space<vmem>>, %arg14: memref<64x32xbf16, #tpu.memory_space<vmem>>, %arg15: memref<1x32xf32, #tpu.memory_space<vmem>>, %arg16: memref<1x32x32xf32, #tpu.memory_space<vmem>>, %arg17: memref<32x32xf32, #tpu.memory_space<vmem>>) attributes {dimension_semantics = [#tpu.dimension_semantics<parallel>, #tpu.dimension_semantics<arbitrary>], iteration_bounds = array<i64: 2, 4>, scalar_prefetch = 0 : i64, scratch_operands = 1 : i64, tpu.core_type = #tpu.core_type<tc>, window_params = [{transform_indices = @transform_0, window_bounds = array<i64: 1, 32, 32>}, {transform_indices = @transform_1, window_bounds = array<i64: 1, 32, 8>}, {transform_indices = @transform_2, window_bounds = array<i64: 1, 1, 8>}, {transform_indices = @transform_3, window_bounds = array<i64: 1, 32, 8>}, {transform_indices = @transform_4, window_bounds = array<i64: 1, 1, 8>}, {transform_indices = @transform_5, window_bounds = array<i64: 1, 8, 32>}, {pipeline_mode = #tpu.pipeline_mode<synchronous>, transform_indices = @transform_6, window_bounds = array<i64: 1, 32>}, {pipeline_mode = #tpu.pipeline_mode<synchronous>, transform_indices = @transform_7, window_bounds = array<i64: 32, 64>}, {pipeline_mode = #tpu.pipeline_mode<synchronous>, transform_indices = @transform_8, window_bounds = array<i64: 32, 64>}, {pipeline_mode = #tpu.pipeline_mode<synchronous>, transform_indices = @transform_9, window_bounds = array<i64: 1, 64>}, {pipeline_mode = #tpu.pipeline_mode<synchronous>, transform_indices = @transform_10, window_bounds = array<i64: 1, 64>}, {pipeline_mode = #tpu.pipeline_mode<synchronous>, transform_indices = @transform_11, window_bounds = array<i64: 1, 64>}, {pipeline_mode = #tpu.pipeline_mode<synchronous>, transform_indices = @transform_12, window_bounds = array<i64: 64, 32>}, {pipeline_mode = #tpu.pipeline_mode<synchronous>, transform_indices = @transform_13, window_bounds = array<i64: 1, 32>}, {transform_indices = @transform_14, window_bounds = array<i64: 1, 32, 32>}]} {
    %c0 = arith.constant 0 : index
    %c0_0 = arith.constant 0 : index
    %c0_1 = arith.constant 0 : index
    %0 = vector.load %arg2[%c0, %c0_0, %c0_1] : memref<1x32x32xf32, #tpu.memory_space<vmem>>, vector<1x32x32xf32>
    %1 = vector.shape_cast %0 : vector<1x32x32xf32> to vector<32x32xf32>
    %2 = arith.truncf %1 : vector<32x32xf32> to vector<32x32xbf16>
    %c0_2 = arith.constant 0 : index
    %c0_3 = arith.constant 0 : index
    %c0_4 = arith.constant 0 : index
    %3 = vector.load %arg3[%c0_2, %c0_3, %c0_4] : memref<1x32x8xbf16, #tpu.memory_space<vmem>>, vector<1x32x8xbf16>
    %4 = vector.shape_cast %3 : vector<1x32x8xbf16> to vector<32x8xbf16>
    %cst = arith.constant dense<0.000000e+00> : vector<32x8xf32>
    %5 = tpu.matmul %2, %4, %cst {dimension_numbers = #tpu.dot_dimension_numbers<[1], [0], [0], [1], [0, 0, 1, 1], [], []>} : vector<32x32xbf16>, vector<32x8xbf16>, vector<32x8xf32> -> vector<32x8xf32>
    %c0_5 = arith.constant 0 : index
    %c0_6 = arith.constant 0 : index
    %c0_7 = arith.constant 0 : index
    %6 = vector.load %arg4[%c0_5, %c0_6, %c0_7] : memref<1x1x8xf32, #tpu.memory_space<vmem>>, vector<1x1x8xf32>
    %7 = vector.shape_cast %6 : vector<1x1x8xf32> to vector<1x8xf32>
    %8 = vector.broadcast %7 : vector<1x8xf32> to vector<32x8xf32>
    %9 = arith.addf %5, %8 : vector<32x8xf32>
    %c0_8 = arith.constant 0 : index
    %c0_9 = arith.constant 0 : index
    %c0_10 = arith.constant 0 : index
    %10 = vector.load %arg5[%c0_8, %c0_9, %c0_10] : memref<1x32x8xbf16, #tpu.memory_space<vmem>>, vector<1x32x8xbf16>
    %11 = vector.shape_cast %10 : vector<1x32x8xbf16> to vector<32x8xbf16>
    %cst_11 = arith.constant dense<0.000000e+00> : vector<32x8xf32>
    %12 = tpu.matmul %2, %11, %cst_11 {dimension_numbers = #tpu.dot_dimension_numbers<[1], [0], [0], [1], [0, 0, 1, 1], [], []>} : vector<32x32xbf16>, vector<32x8xbf16>, vector<32x8xf32> -> vector<32x8xf32>
    %c0_12 = arith.constant 0 : index
    %c0_13 = arith.constant 0 : index
    %c0_14 = arith.constant 0 : index
    %13 = vector.load %arg6[%c0_12, %c0_13, %c0_14] : memref<1x1x8xf32, #tpu.memory_space<vmem>>, vector<1x1x8xf32>
    %14 = vector.shape_cast %13 : vector<1x1x8xf32> to vector<1x8xf32>
    %15 = vector.broadcast %14 : vector<1x8xf32> to vector<32x8xf32>
    %16 = arith.addf %12, %15 : vector<32x8xf32>
    %17 = vector.extract_strided_slice %9 {offsets = [0, 0], sizes = [16, 8], strides = [1, 1]} : vector<32x8xf32> to vector<16x8xf32>
    %18 = arith.truncf %17 : vector<16x8xf32> to vector<16x8xbf16>
    %19 = vector.extract_strided_slice %9 {offsets = [16, 0], sizes = [16, 8], strides = [1, 1]} : vector<32x8xf32> to vector<16x8xf32>
    %20 = arith.truncf %19 : vector<16x8xf32> to vector<16x8xbf16>
    %21 = vector.extract_strided_slice %16 {offsets = [0, 0], sizes = [16, 8], strides = [1, 1]} : vector<32x8xf32> to vector<16x8xf32>
    %22 = arith.truncf %21 : vector<16x8xf32> to vector<16x8xbf16>
    %23 = vector.extract_strided_slice %16 {offsets = [16, 0], sizes = [16, 8], strides = [1, 1]} : vector<32x8xf32> to vector<16x8xf32>
    %24 = arith.truncf %23 : vector<16x8xf32> to vector<16x8xbf16>
    %cst_15 = arith.constant dense<0.000000e+00> : vector<16x16xf32>
    %25 = tpu.matmul %18, %20, %cst_15 {dimension_numbers = #tpu.dot_dimension_numbers<[1], [1], [0], [0], [0, 0, 1, 0], [], []>} : vector<16x8xbf16>, vector<16x8xbf16>, vector<16x16xf32> -> vector<16x16xf32>
    %cst_16 = arith.constant dense<0xFF800000> : vector<16xf32>
    %26 = vector.multi_reduction <maximumf>, %25, %cst_16 [1] : vector<16x16xf32> to vector<16xf32>
    %27 = vector.shape_cast %26 : vector<16xf32> to vector<16x1xf32>
    %cst_17 = arith.constant dense<0xFF800000> : vector<1xf32>
    %28 = vector.multi_reduction <maximumf>, %27, %cst_17 [0] : vector<16x1xf32> to vector<1xf32>
    %29 = vector.shape_cast %28 : vector<1xf32> to vector<1x1xf32>
    %30 = vector.broadcast %27 : vector<16x1xf32> to vector<16x16xf32>
    %31 = arith.subf %25, %30 : vector<16x16xf32>
    %32 = math.exp %31 : vector<16x16xf32>
    %cst_18 = arith.constant dense<0.000000e+00> : vector<16xf32>
    %33 = vector.multi_reduction <add>, %32, %cst_18 [1] : vector<16x16xf32> to vector<16xf32>
    %34 = vector.shape_cast %33 : vector<16xf32> to vector<16x1xf32>
    %35 = tpu.reciprocal %34 {approx = true} : vector<16x1xf32> -> vector<16x1xf32>
    %36 = vector.broadcast %35 : vector<16x1xf32> to vector<16x16xf32>
    %37 = arith.mulf %32, %36 : vector<16x16xf32>
    %38 = arith.truncf %37 : vector<16x16xf32> to vector<16x16xbf16>
    %39 = vector.broadcast %29 : vector<1x1xf32> to vector<16x1xf32>
    %40 = arith.subf %27, %39 : vector<16x1xf32>
    %41 = math.exp %40 : vector<16x1xf32>
    %42 = vector.broadcast %41 : vector<16x1xf32> to vector<16x16xf32>
    %43 = arith.mulf %32, %42 : vector<16x16xf32>
    %cst_19 = arith.constant dense<0.000000e+00> : vector<16xf32>
    %44 = vector.multi_reduction <add>, %43, %cst_19 [0] : vector<16x16xf32> to vector<16xf32>
    %45 = vector.shape_cast %44 : vector<16xf32> to vector<1x16xf32>
    %cst_20 = arith.constant 1.000000e-30 : f32
    %46 = vector.broadcast %cst_20 : f32 to vector<1x16xf32>
    %47 = arith.maximumf %45, %46 : vector<1x16xf32>
    %48 = tpu.reciprocal %47 {approx = true} : vector<1x16xf32> -> vector<1x16xf32>
    %49 = vector.broadcast %48 : vector<1x16xf32> to vector<16x16xf32>
    %50 = arith.mulf %43, %49 : vector<16x16xf32>
    %51 = arith.truncf %50 : vector<16x16xf32> to vector<16x16xbf16>
    %cst_21 = arith.constant dense<0.000000e+00> : vector<16x8xf32>
    %52 = tpu.matmul %38, %24, %cst_21 {dimension_numbers = #tpu.dot_dimension_numbers<[1], [0], [0], [1], [0, 0, 1, 1], [], []>} : vector<16x16xbf16>, vector<16x8xbf16>, vector<16x8xf32> -> vector<16x8xf32>
    %cst_22 = arith.constant dense<0.000000e+00> : vector<16x8xf32>
    %53 = tpu.matmul %51, %22, %cst_22 {dimension_numbers = #tpu.dot_dimension_numbers<[0], [0], [1], [1], [0, 1, 1, 1], [], []>} : vector<16x16xbf16>, vector<16x8xbf16>, vector<16x8xf32> -> vector<16x8xf32>
    %54 = arith.truncf %52 : vector<16x8xf32> to vector<16x8xbf16>
    %55 = arith.truncf %53 : vector<16x8xf32> to vector<16x8xbf16>
    %56 = tpu.concatenate %54, %55 in 0 : vector<16x8xbf16>, vector<16x8xbf16> -> vector<32x8xbf16>
    %c0_i32 = arith.constant 0 : i32
    %57 = arith.cmpi eq, %arg1, %c0_i32 : i32
    %58 = arith.extui %57 : i1 to i32
    %c0_i32_23 = arith.constant 0 : i32
    %59 = arith.cmpi ne, %58, %c0_i32_23 : i32
    scf.if %59 {
      %c0_33 = arith.constant 0 : index
      %c0_34 = arith.constant 0 : index
      %69 = vector.load %arg8[%c0_33, %c0_34] : memref<1x32xf32, #tpu.memory_space<vmem>>, vector<1x32xf32>
      %70 = vector.shape_cast %69 : vector<1x32xf32> to vector<1x32xf32>
      %71 = vector.broadcast %70 : vector<1x32xf32> to vector<32x32xf32>
      %c0_35 = arith.constant 0 : index
      %c0_36 = arith.constant 0 : index
      %72 = vector.load %arg17[%c0_35, %c0_36] : memref<32x32xf32, #tpu.memory_space<vmem>>, vector<32x32xf32>
      tpu.vector_store %arg17[%c0_35, %c0_36], %71 {strides = array<i32>} : memref<32x32xf32, #tpu.memory_space<vmem>>, vector<32x32xf32>,
    } else {
    }
    %c0_24 = arith.constant 0 : index
    %c0_25 = arith.constant 0 : index
    %60 = vector.load %arg17[%c0_24, %c0_25] : memref<32x32xf32, #tpu.memory_space<vmem>>, vector<32x32xf32>
    %c0_26 = arith.constant 0 : index
    %c0_27 = arith.constant 0 : index
    %c0_28 = arith.constant 0 : index
    %61 = vector.load %arg7[%c0_26, %c0_27, %c0_28] : memref<1x8x32xbf16, #tpu.memory_space<vmem>>, vector<1x8x32xbf16>
    %62 = vector.shape_cast %61 : vector<1x8x32xbf16> to vector<8x32xbf16>
    %cst_29 = arith.constant dense<0.000000e+00> : vector<32x32xf32>
    %63 = tpu.matmul %56, %62, %cst_29 {dimension_numbers = #tpu.dot_dimension_numbers<[1], [0], [0], [1], [0, 0, 1, 1], [], []>} : vector<32x8xbf16>, vector<8x32xbf16>, vector<32x32xf32> -> vector<32x32xf32>
    %64 = arith.addf %60, %63 : vector<32x32xf32>
    %c0_30 = arith.constant 0 : index
    %c0_31 = arith.constant 0 : index
    %65 = vector.load %arg17[%c0_30, %c0_31] : memref<32x32xf32, #tpu.memory_space<vmem>>, vector<32x32xf32>
    tpu.vector_store %arg17[%c0_30, %c0_31], %64 {strides = array<i32>} : memref<32x32xf32, #tpu.memory_space<vmem>>, vector<32x32xf32>,
    %c3_i32 = arith.constant 3 : i32
    %66 = arith.cmpi eq, %arg1, %c3_i32 : i32
    %67 = arith.extui %66 : i1 to i32
    %c0_i32_32 = arith.constant 0 : i32
    %68 = arith.cmpi ne, %67, %c0_i32_32 : i32
    scf.if %68 {
      %c0_33 = arith.constant 0 : index
      %c0_34 = arith.constant 0 : index
      %69 = vector.load %arg17[%c0_33, %c0_34] : memref<32x32xf32, #tpu.memory_space<vmem>>, vector<32x32xf32>
      %c0_35 = arith.constant 0 : index
      %c0_36 = arith.constant 0 : index
      %70 = vector.load %arg9[%c0_35, %c0_36] : memref<32x64xbf16, #tpu.memory_space<vmem>>, vector<32x64xbf16>
      %cst_37 = arith.constant dense<0.000000e+00> : vector<32x64xf32>
      %71 = tpu.matmul %2, %70, %cst_37 {dimension_numbers = #tpu.dot_dimension_numbers<[1], [0], [0], [1], [0, 0, 1, 1], [], []>} : vector<32x32xbf16>, vector<32x64xbf16>, vector<32x64xf32> -> vector<32x64xf32>
      %72 = arith.truncf %69 : vector<32x32xf32> to vector<32x32xbf16>
      %c0_38 = arith.constant 0 : index
      %c0_39 = arith.constant 0 : index
      %73 = vector.load %arg10[%c0_38, %c0_39] : memref<32x64xbf16, #tpu.memory_space<vmem>>, vector<32x64xbf16>
      %cst_40 = arith.constant dense<0.000000e+00> : vector<32x64xf32>
      %74 = tpu.matmul %72, %73, %cst_40 {dimension_numbers = #tpu.dot_dimension_numbers<[1], [0], [0], [1], [0, 0, 1, 1], [], []>} : vector<32x32xbf16>, vector<32x64xbf16>, vector<32x64xf32> -> vector<32x64xf32>
      %75 = arith.addf %71, %74 : vector<32x64xf32>
      %c0_41 = arith.constant 0 : index
      %c0_42 = arith.constant 0 : index
      %76 = vector.load %arg11[%c0_41, %c0_42] : memref<1x64xf32, #tpu.memory_space<vmem>>, vector<1x64xf32>
      %77 = vector.broadcast %76 : vector<1x64xf32> to vector<32x64xf32>
      %78 = arith.addf %75, %77 : vector<32x64xf32>
      %cst_43 = arith.constant dense<0.000000e+00> : vector<32xf32>
      %79 = vector.multi_reduction <add>, %78, %cst_43 [1] : vector<32x64xf32> to vector<32xf32>
      %80 = vector.shape_cast %79 : vector<32xf32> to vector<32x1xf32>
      %cst_44 = arith.constant 6.400000e+01 : f32
      %81 = vector.broadcast %cst_44 : f32 to vector<32x1xf32>
      %82 = arith.divf %80, %81 : vector<32x1xf32>
      %83 = vector.broadcast %82 : vector<32x1xf32> to vector<32x64xf32>
      %84 = arith.subf %78, %83 : vector<32x64xf32>
      %85 = arith.mulf %84, %84 : vector<32x64xf32>
      %cst_45 = arith.constant dense<0.000000e+00> : vector<32xf32>
      %86 = vector.multi_reduction <add>, %85, %cst_45 [1] : vector<32x64xf32> to vector<32xf32>
      %87 = vector.shape_cast %86 : vector<32xf32> to vector<32x1xf32>
      %cst_46 = arith.constant 6.400000e+01 : f32
      %88 = vector.broadcast %cst_46 : f32 to vector<32x1xf32>
      %89 = arith.divf %87, %88 : vector<32x1xf32>
      %90 = vector.broadcast %82 : vector<32x1xf32> to vector<32x64xf32>
      %91 = arith.subf %78, %90 : vector<32x64xf32>
      %cst_47 = arith.constant 9.99999974E-6 : f32
      %92 = vector.broadcast %cst_47 : f32 to vector<32x1xf32>
      %93 = arith.addf %89, %92 : vector<32x1xf32>
      %94 = math.rsqrt %93 : vector<32x1xf32>
      %95 = vector.broadcast %94 : vector<32x1xf32> to vector<32x64xf32>
      %96 = arith.mulf %91, %95 : vector<32x64xf32>
      %c0_48 = arith.constant 0 : index
      %c0_49 = arith.constant 0 : index
      %97 = vector.load %arg12[%c0_48, %c0_49] : memref<1x64xf32, #tpu.memory_space<vmem>>, vector<1x64xf32>
      %98 = vector.broadcast %97 : vector<1x64xf32> to vector<32x64xf32>
      %99 = arith.mulf %96, %98 : vector<32x64xf32>
      %c0_50 = arith.constant 0 : index
      %c0_51 = arith.constant 0 : index
      %100 = vector.load %arg13[%c0_50, %c0_51] : memref<1x64xf32, #tpu.memory_space<vmem>>, vector<1x64xf32>
      %101 = vector.broadcast %100 : vector<1x64xf32> to vector<32x64xf32>
      %102 = arith.addf %99, %101 : vector<32x64xf32>
      %cst_52 = arith.constant 5.000000e-01 : f32
      %103 = vector.broadcast %cst_52 : f32 to vector<32x64xf32>
      %104 = arith.mulf %103, %102 : vector<32x64xf32>
      %cst_53 = arith.constant 0.707106769 : f32
      %105 = vector.broadcast %cst_53 : f32 to vector<32x64xf32>
      %106 = arith.mulf %102, %105 : vector<32x64xf32>
      %107 = math.erf %106 : vector<32x64xf32>
      %cst_54 = arith.constant 1.000000e+00 : f32
      %108 = vector.broadcast %cst_54 : f32 to vector<32x64xf32>
      %109 = arith.addf %108, %107 : vector<32x64xf32>
      %110 = arith.mulf %104, %109 : vector<32x64xf32>
      %111 = arith.truncf %110 : vector<32x64xf32> to vector<32x64xbf16>
      %c0_55 = arith.constant 0 : index
      %c0_56 = arith.constant 0 : index
      %112 = vector.load %arg14[%c0_55, %c0_56] : memref<64x32xbf16, #tpu.memory_space<vmem>>, vector<64x32xbf16>
      %cst_57 = arith.constant dense<0.000000e+00> : vector<32x32xf32>
      %113 = tpu.matmul %111, %112, %cst_57 {dimension_numbers = #tpu.dot_dimension_numbers<[1], [0], [0], [1], [0, 0, 1, 1], [], []>} : vector<32x64xbf16>, vector<64x32xbf16>, vector<32x32xf32> -> vector<32x32xf32>
      %c0_58 = arith.constant 0 : index
      %c0_59 = arith.constant 0 : index
      %114 = vector.load %arg15[%c0_58, %c0_59] : memref<1x32xf32, #tpu.memory_space<vmem>>, vector<1x32xf32>
      %115 = vector.broadcast %114 : vector<1x32xf32> to vector<32x32xf32>
      %116 = arith.addf %113, %115 : vector<32x32xf32>
      %117 = arith.addf %1, %116 : vector<32x32xf32>
      %c0_60 = arith.constant 0 : index
      %c0_61 = arith.constant 0 : index
      %c0_62 = arith.constant 0 : index
      %118 = vector.load %arg16[%c0_60, %c0_61, %c0_62] : memref<1x32x32xf32, #tpu.memory_space<vmem>>, vector<1x32x32xf32>
      %119 = vector.shape_cast %118 : vector<1x32x32xf32> to vector<32x32xf32>
      %120 = vector.shape_cast %117 : vector<32x32xf32> to vector<1x32x32xf32>
      tpu.vector_store %arg16[%c0_60, %c0_61, %c0_62], %120 {strides = array<i32>} : memref<1x32x32xf32, #tpu.memory_space<vmem>>, vector<1x32x32xf32>,
    } else {
    }
    return
  }
  func.func @transform_0(%arg0: i32, %arg1: i32) -> (i32, i32, i32) {
    %c0_i32 = arith.constant 0 : i32
    %c0_i32_0 = arith.constant 0 : i32
    %c0_i32_1 = arith.constant 0 : i32
    return %arg0, %c0_i32, %c0_i32_0 : i32, i32, i32
  }
  func.func @transform_1(%arg0: i32, %arg1: i32) -> (i32, i32, i32) {
    %c0_i32 = arith.constant 0 : i32
    %c0_i32_0 = arith.constant 0 : i32
    %c0_i32_1 = arith.constant 0 : i32
    return %arg1, %c0_i32, %c0_i32_0 : i32, i32, i32
  }
  func.func @transform_2(%arg0: i32, %arg1: i32) -> (i32, i32, i32) {
    %c0_i32 = arith.constant 0 : i32
    %c0_i32_0 = arith.constant 0 : i32
    %c0_i32_1 = arith.constant 0 : i32
    return %arg1, %c0_i32, %c0_i32_0 : i32, i32, i32
  }
  func.func @transform_3(%arg0: i32, %arg1: i32) -> (i32, i32, i32) {
    %c0_i32 = arith.constant 0 : i32
    %c0_i32_0 = arith.constant 0 : i32
    %c0_i32_1 = arith.constant 0 : i32
    return %arg1, %c0_i32, %c0_i32_0 : i32, i32, i32
  }
  func.func @transform_4(%arg0: i32, %arg1: i32) -> (i32, i32, i32) {
    %c0_i32 = arith.constant 0 : i32
    %c0_i32_0 = arith.constant 0 : i32
    %c0_i32_1 = arith.constant 0 : i32
    return %arg1, %c0_i32, %c0_i32_0 : i32, i32, i32
  }
  func.func @transform_5(%arg0: i32, %arg1: i32) -> (i32, i32, i32) {
    %c0_i32 = arith.constant 0 : i32
    %c0_i32_0 = arith.constant 0 : i32
    %c0_i32_1 = arith.constant 0 : i32
    return %arg1, %c0_i32, %c0_i32_0 : i32, i32, i32
  }
  func.func @transform_6(%arg0: i32, %arg1: i32) -> (i32, i32) {
    %c0_i32 = arith.constant 0 : i32
    %c0_i32_0 = arith.constant 0 : i32
    %c0_i32_1 = arith.constant 0 : i32
    return %c0_i32, %c0_i32_0 : i32, i32
  }
  func.func @transform_7(%arg0: i32, %arg1: i32) -> (i32, i32) {
    %c0_i32 = arith.constant 0 : i32
    %c0_i32_0 = arith.constant 0 : i32
    %c0_i32_1 = arith.constant 0 : i32
    return %c0_i32, %c0_i32_0 : i32, i32
  }
  func.func @transform_8(%arg0: i32, %arg1: i32) -> (i32, i32) {
    %c0_i32 = arith.constant 0 : i32
    %c0_i32_0 = arith.constant 0 : i32
    %c0_i32_1 = arith.constant 0 : i32
    return %c0_i32, %c0_i32_0 : i32, i32
  }
  func.func @transform_9(%arg0: i32, %arg1: i32) -> (i32, i32) {
    %c0_i32 = arith.constant 0 : i32
    %c0_i32_0 = arith.constant 0 : i32
    %c0_i32_1 = arith.constant 0 : i32
    return %c0_i32, %c0_i32_0 : i32, i32
  }
  func.func @transform_10(%arg0: i32, %arg1: i32) -> (i32, i32) {
    %c0_i32 = arith.constant 0 : i32
    %c0_i32_0 = arith.constant 0 : i32
    %c0_i32_1 = arith.constant 0 : i32
    return %c0_i32, %c0_i32_0 : i32, i32
  }
  func.func @transform_11(%arg0: i32, %arg1: i32) -> (i32, i32) {
    %c0_i32 = arith.constant 0 : i32
    %c0_i32_0 = arith.constant 0 : i32
    %c0_i32_1 = arith.constant 0 : i32
    return %c0_i32, %c0_i32_0 : i32, i32
  }
  func.func @transform_12(%arg0: i32, %arg1: i32) -> (i32, i32) {
    %c0_i32 = arith.constant 0 : i32
    %c0_i32_0 = arith.constant 0 : i32
    %c0_i32_1 = arith.constant 0 : i32
    return %c0_i32, %c0_i32_0 : i32, i32
  }
  func.func @transform_13(%arg0: i32, %arg1: i32) -> (i32, i32) {
    %c0_i32 = arith.constant 0 : i32
    %c0_i32_0 = arith.constant 0 : i32
    %c0_i32_1 = arith.constant 0 : i32
    return %c0_i32, %c0_i32_0 : i32, i32
  }
  func.func @transform_14(%arg0: i32, %arg1: i32) -> (i32, i32, i32) {
    %c0_i32 = arith.constant 0 : i32
    %c0_i32_0 = arith.constant 0 : i32
    %c0_i32_1 = arith.constant 0 : i32
    return %arg0, %c0_i32, %c0_i32_0 : i32, i32, i32
  }
}

</mosaic_0001>

<bundles_post_ra>
// kernel: tpu_custom_call.1
= control target key start
LH: loop header
LB: loop body
LE: loop exit
PB: predicated region body
PF: predicated region fallthrough
CT: control target
= control target key end

     0   :  { %s2257_s0 = inlined_call_operand.vmem [shape: f32[2,32,32], index: 0, kind: input, shape index: {}]   ;;  %s2258_s1 = inlined_call_operand.vmem [shape: bf16[4,32,8], index: 1, kind: input, shape index: {}]   ;;  %s2259_s2 = inlined_call_operand.vmem [shape: f32[4,1,8], index: 2, kind: input, shape index: {}]   ;;  %s2260_s3 = inlined_call_operand.vmem [shape: bf16[4,32,8], index: 3, kind: input, shape index: {}]   ;;  %s2261_s4 = inlined_call_operand.vmem [shape: f32[4,1,8], index: 4, kind: input, shape index: {}]   ;;  %s2262_s5 = inlined_call_operand.vmem [shape: bf16[4,8,32], index: 5, kind: input, shape index: {}]   ;;  %s2263_s6 = inlined_call_operand.vmem [shape: f32[1,32], index: 6, kind: input, shape index: {}]   ;;  %s2264_s7 = inlined_call_operand.vmem [shape: bf16[32,64], index: 7, kind: input, shape index: {}]   ;;  %s2265_s8 = inlined_call_operand.vmem [shape: bf16[32,64], index: 8, kind: input, shape index: {}]   ;;  %s2266_s9 = inlined_call_operand.vmem [shape: f32[1,64], index: 9, kind: input, shape index: {}]   ;;  %s2267_s10 = inlined_call_operand.vmem [shape: f32[1,64], index: 10, kind: input, shape index: {}]   ;;  %s2268_s11 = inlined_call_operand.vmem [shape: f32[1,64], index: 11, kind: input, shape index: {}]   ;;  %s2269_s12 = inlined_call_operand.vmem [shape: bf16[64,32], index: 12, kind: input, shape index: {}]   ;;  %s2270_s13 = inlined_call_operand.vmem [shape: f32[1,32], index: 13, kind: input, shape index: {}]   ;;  %s2271_s14 = inlined_call_operand.hbm [shape: f32[2,32,32], index: 14, kind: output, shape index: {}]  }
   0x1   :  { %2285 = sst [smem:[#allocation17_spill]] %s2271_s14 }
   0x2   :  { %19 = vsyncpa [#allocation4], 0 }
   0x3   :  { %21 = vsyncpa [#allocation4 + $0x1], 0  ;;  %s1967_s29 = smov 0   ;;  %s1969_s30 = smov 0  }
   0x4   :  { %s1971_s15 = smov 0   ;;  %s1973_s16 = smov 0  }
   0x5   :  { %s1975_s17 = smov 0   ;;  %s1977_s18 = smov 0  }
   0x6   :  { %s1979_s19 = smov 0   ;;  %s1981_s20 = smov 0  }
   0x7 LB: > { %2286 = sst [smem:[#allocation6_spill]] %s1857_s29  ;;  %s1517_s21 = sadd.s32 4294967295, %s1885_s20   ;;  %s1885_s20 = sphi %s1981_s20, %s27_s20   ;;  %s1881_s19 = sphi %s1979_s19, %s2312_s19   ;;  %s1877_s18 = sphi %s1977_s18, %s2311_s18   ;;  %s1873_s17 = sphi %s1975_s17, %s2310_s17   ;;  %s1869_s16 = sphi %s1973_s16, %s2309_s16   ;;  %s1865_s15 = sphi %s1971_s15, %s2308_s15   ;;  %s1861_s30 = sphi %s1969_s30, %s2307_s30   ;;  %s1857_s29 = sphi %s1967_s29, %s2306_s29  }
   0x8   : > { %2287 = sst [smem:[#allocation7_spill]] %s1861_s30  ;;  %s1518_s22 = sadd.s32 4294967294, %s1885_s20  }
   0x9   : > { %2288 = sst [smem:[#allocation8_spill]] %s1865_s15  ;;  %s36_s23 = sadd.s32 1, %s1877_s18 }
   0xa   : > { %2289 = sst [smem:[#allocation9_spill]] %s1877_s18  ;;  %p37_p0 = scmp.ge.s32.totalorder %s36_s23, 4 }
   0xb   : > { %2290 = sst [smem:[#allocation10_spill]] %s1881_s19  ;;  %s39_s24 = sadd.s32 1, %s1881_s19 }
   0xc   : > { %2291 = sst [smem:[#allocation11_spill]] %s1885_s20  ;;  %p380_p1 = scmp.ne.s32.totalorder %s1865_s15, %s1861_s30 }
   0xd   : > { %p381_p2 = scmp.eq.s32.totalorder %s1517_s21, 7  ;;  %s2314_s23 = smov (%p37_p0, %s36_s23), 0 }
   0xe   : > { %2292 = sst [smem:[#allocation12_spill]] %s2314_s23  ;;  %s2316_s24 = smov (!%p37_p0, %s39_s24), %s1881_s19 }
   0xf   : > { %p2016_p3 = por %p381_p2, %p380_p1  ;;  %p386_p4 = scmp.ne.s32.totalorder %s1861_s30, %s1857_s29 }
  0x10   : > { %p41_p5 = scmp.ge.s32.totalorder %s2316_s24, 2  ;;  %p387_p6 = scmp.eq.s32.totalorder %s1518_s22, 7 }
  0x11   : > { %s2293_s25 = scalar_select %p2016_p3, 1, 0 }
  0x12   : > { %p1521_p7 = scmp.ge.s32.totalorder %s1885_s20, 1  ;;  %p472_p8 = scmp.lt.s32.totalorder %s1885_s20, 9 }
  0x13   : > { %2294 = sst [smem:[#allocation13_spill]] %s2293_s25  ;;  %s2318_s24 = smov (%p41_p5, %s2316_s24), 0 }
  0x14   : > { %2295 = sst [smem:[#allocation14_spill]] %s2318_s24  ;;  %p2026_p9 = por %p387_p6, %p386_p4 }
  0x15   : > { %p473_p10 = pnand %p1521_p7, %p472_p8  ;;  %s367_s27 = ssub.s32 %s1881_s19, %s2318_s24 }
  0x16   : > { %s2296_s26 = scalar_select %p2026_p9, 1, 0 }
  0x17   : > { %s370_s28 = sadd.s32 1, %s1865_s15  ;;  %p368_p11 = scmp.eq.s32.totalorder %s367_s27, 0 }
  0x18   : > { %2297 = sst [smem:[#allocation15_spill]] %s2296_s26  ;;  %476 = sbr.rel (%p473_p10) target bundleno = 1955 (0x7a3), region = 76 }
  0x19   : > { %s2034_s21 = scalar_select %p368_p11, %s1865_s15, %s370_s28  }
  0x1a   : > { %s2280_s22 = sand.u32 (!%p473_p10), 1, %s1861_s30   ;;  %p543_p12 = scmp.lt.s32.totalorder (!%p473_p10), %s1869_s16, 3 }
  0x1b   : > { %2298 = sst [smem:[#allocation16_spill]] %s2034_s21  ;;  %s2040_s23 = sshll.u32 (!%p473_p10), %s2280_s22, 5 }
  0x1c   : > { %p538_p13 = scmp.lt.s32.totalorder (!%p473_p10), %s1873_s17, 1  ;;  %p1543_p0 = scmp.ne.s32.totalorder (!%p473_p10), %s1869_s16, 0 }
  0x1d   : > { %s2044_s18 = scalar_select %p543_p12, %s1869_s16, 3  ;;  %vm593_vm0 = vcmask 261120   ;;  %v1887_v8 = vmov 0.0   ;;  %vm1888_vm1 = vmmov 0   ;;  %vm725_vm2 = vcmask 64512  }
  0x1e   : > { %s539_s27 = scalar_select %p538_p13, %s1873_s17, 1  ;;  %vm773_vm3 = vcmask 130048  }
  0x1f   : > { %s1572_s28 = sshll.u32 %s2044_s18, 4  ;;  %s1529_s24 = sshll.u32 %s2044_s18, 2 }
  0x20   : > { %s547_s15 = scalar_lea.vmem %s2258_s1, %s1572_s28  ;;  %s2057_s20 = scalar_lea.vmem %s2262_s5, %s1529_s24 }
  0x21   : > { %v1751_v0 = vld [vmem:[%s547_s15 + $0x8] sm:$0xff]   ;;  %s1571_s22 = sshll.u32 %s539_s27, 5  ;;  %v1752_v1 = vld [vmem:[%s547_s15] sm:$0xff]   ;;  %s555_s24 = scalar_lea.vmem %s2260_s3, %s1572_s28 }
  0x22   : > { %s542_s30 = scalar_lea.vmem %s2257_s0, %s1571_s22  ;;  %1606 = vmatprep.subr.bf16.mxu0 %v1751_v0  ;;  %v1753_v21 = vld [vmem:[%s555_s24 + $0x8] sm:$0xff]   ;;  %v1754_v22 = vld [vmem:[%s555_s24] sm:$0xff]   ;;  %s558_s21 = scalar_lea.vmem %s2261_s4, %s2044_s18 }
  0x23   : > { %v2062_v2 = vld [vmem:[%s542_s30] sm:$0xff]  ;;  %v2064_v3 = vld [vmem:[%s542_s30 + $0x8] sm:$0xff]  ;;  %1607 = vmatpush3.bf16.msra.mxu0 %v1751_v0  ;;  %v2070_v5 = vld [vmem:[%s542_s30 + $0x10] sm:$0xff]  ;;  %1614 = vmatprep.subr.bf16.mxu1 %v1753_v21 }
  0x24   : > { %v2068_v4 = vpack.c.bf16 %v2064_v3, %v2062_v2  ;;  %v2072_v6 = vld [vmem:[%s542_s30 + $0x18] sm:$0xff]  ;;  %1608 = vmatprep.subr.bf16.mxu0 %v1752_v1  ;;  %s550_s30 = scalar_lea.vmem %s2259_s2, %s2044_s18  ;;  %1615 = vmatpush3.bf16.msra.mxu1 %v1753_v21  ;;  %v1535_v51 = vld [vmem:[%s558_s21] ss:$0 sm:$0xff]  ;;  %s2113_s18 = scalar_lea.vmem [#allocation3], %s2040_s23 }
  0x25   : > { %v2080_v7 = vpack.c.bf16 %v2072_v6, %v2070_v5  ;;  %v1530_v10 = vld [vmem:[%s550_s30] ss:$0 sm:$0xff]  ;;  %1616 = vmatprep.subr.bf16.mxu1 %v1754_v22 }
  0x26   : > { %1610 = vmatprep.mubr.msk.bf16.mxu0 %vm593_vm0, %v2068_v4  ;;  %1618 = vmatprep.mubr.msk.bf16.mxu1 %vm593_vm0, %v2068_v4 }
  0x27   : > { %1609 = vmatpush3.bf16.msra.mxu0 %v1752_v1 }
  0x28   : > { %1622 = vmatprep.subr.bf16.mxu0 %v1887_v8  ;;  %1617 = vmatpush3.bf16.msra.mxu1 %v1754_v22 }
  0x29   : > { %1628 = vmatprep.subr.bf16.mxu1 %v1887_v8 }
  0x2a   : > { %1611 = vmatmul.mubr.msk.bf16.vlgmr.msra.gmra.mxu0 %vm593_vm0, %v2080_v7 }
  0x2b   : > { %1624 = vmatprep.mubr.msk.bf16.mxu0 %vm1888_vm1, %v1887_v8  ;;  %1619 = vmatmul.mubr.msk.bf16.vlgmr.msra.gmra.mxu1 %vm593_vm0, %v2080_v7 }
  0x2c   : > { %1630 = vmatprep.mubr.msk.bf16.mxu1 %vm1888_vm1, %v1887_v8 }
  0xea   : > { %v1612_v9 = vpop.f32.mrf.mxu0 }
  0xeb   : > { %v643_v13 = vadd.f32 %v1612_v9, %v1530_v10  ;;  %v1620_v50 = vpop.f32.mrf.mxu1 }
  0xec   : > { %v634_v11 = vpop.f32.mrf.mxu0  ;;  %v715_v53 = vadd.f32 %v1620_v50, %v1535_v51 }
  0xed   : > { %v635_v19 = vadd.f32 %v1530_v10, %v634_v11  ;;  %v706_v52 = vpop.f32.mrf.mxu1 }
  0xee   : > { %v1613_v12 = vpop.f32.mrf.mxu0  ;;  %v707_v61 = vadd.f32 %v1535_v51, %v706_v52 }
  0xef   : > { %v646_v14 = vadd.f32 %v1613_v12, %v1530_v10  ;;  %v1621_v54 = vpop.f32.mrf.mxu1 }
  0xf0   : > { %v637_v16 = vpop.f32.mrf.mxu0  ;;  %v718_v55 = vadd.f32 %v1621_v54, %v1535_v51 }
  0xf1   : > { %v722_v15 = vpack.c.bf16 %v646_v14, %v643_v13  ;;  %v638_v18 = vadd.f32 %v1530_v10, %v637_v16  ;;  %v709_v63 = vpop.f32.mrf.mxu1 }
  0xf2   : > { %v724_v56 = vpack.c.bf16 %v718_v55, %v715_v53  ;;  %v710_v1 = vadd.f32 %v1535_v51, %v709_v63 }
  0xf3   : > { %v730_v17 = vsel %vm725_vm2, %v722_v15, 0  ;;  %v721_v20 = vpack.c.bf16 %v638_v18, %v635_v19 }
  0xf4   : > { %1623 = vmatpush3.bf16.xpose.msra.mxu0 %v730_v17  ;;  %1629 = vmatpush3.bf16.msra.mxu1 %v724_v56  ;;  %v723_v9 = vpack.c.bf16 %v710_v1, %v707_v61 }
  0xf5   : > { %1634 = vmatprep.subr.bf16.mxu0 %v1887_v8 }
  0xfb   : > { %1625 = vmatmul.mubr.msk.bf16.vlgmr.msra.gmra.mxu0 %vm725_vm2, %v721_v20 }
  0xfc   : > { %1636 = vmatprep.mubr.msk.bf16.mxu0 %vm1888_vm1, %v1887_v8  ;;  %1635 = vmatpush3.bf16.msra.mxu0 %v723_v9 }
 0x1bb   : > { %v766_v23 = vpop.f32.mrf.mxu0 }
 0x1bc   : > { %v774_v24 = vsel %vm773_vm3, %v766_v23, -inf }
 0x1bd   : > { %775 = vmax.xlane.f32.xlu0 %v774_v24  ;;  %v1626_v25 = vpop.f32.mrf.mxu0 }
 0x1bf   : > { %v769_v26 = vpop.f32.mrf.mxu0 }
 0x1c0   : > { %v777_v27 = vsel %vm773_vm3, %v769_v26, -inf }
 0x1c1   : > { %778 = vmax.xlane.f32.xlu0 %v777_v27  ;;  %v1627_v28 = vpop.f32.mrf.mxu0 }
 0x246   : > { %v776_v29 = vpop.xlane.xlu0 %775 }
 0x247   : > { %v787_v30 = vsub.f32 %v766_v23, %v776_v29 }
 0x249   : > { %v789_v31 = vmul.f32 1.442695, %v787_v30 }
 0x24a   : > { %v779_v32 = vpop.xlane.xlu0 %778 }
 0x24b   : > { %1755 = vpow2.f32 %v789_v31  ;;  %v780_v33 = vmax.f32 %v776_v29, %v779_v32  ;;  %v788_v34 = vsub.f32 %v769_v26, %v779_v32 }
 0x24d   : > { %v781_v35 = vrot.slane %v780_v33, 4  ;;  %v791_v36 = vmul.f32 1.442695, %v788_v34 }
 0x24f   : > { %v782_v37 = vmax.f32 %v780_v33, %v781_v35  ;;  %1757 = vpow2.f32 %v791_v36 }
 0x251   : > { %v783_v38 = vrot.slane %v782_v37, 2 }
 0x253   : > { %v784_v39 = vmax.f32 %v782_v37, %v783_v38 }
 0x255   : > { %v785_v40 = vrot.slane %v784_v39, 1 }
 0x257   : > { %v786_v41 = vmax.f32 %v784_v39, %v785_v40 }
 0x258   : > { %v1756_v42 = vpop.eup %1755 }
 0x259   : > { %v804_v43 = vsub.f32 %v776_v29, %v786_v41  ;;  %v805_v44 = vsub.f32 %v779_v32, %v786_v41  ;;  %v793_v45 = vsel %vm773_vm3, %v1756_v42, 0.0 }
 0x25a   : > { %794 = vadd.xlane.f32.xlu1 %v793_v45 }
 0x25b   : > { %v806_v46 = vmul.f32 1.442695, %v804_v43  ;;  %v808_v47 = vmul.f32 1.442695, %v805_v44 }
 0x25c   : > { %v1758_v48 = vpop.eup %1757 }
 0x25d   : > { %1759 = vpow2.f32 %v806_v46  ;;  %v796_v49 = vsel %vm773_vm3, %v1758_v48, 0.0 }
 0x25e   : > { %1761 = vpow2.f32 %v808_v47  ;;  %797 = vadd.xlane.f32.xlu1 %v796_v49 }
 0x26a   : > { %v1760_v57 = vpop.eup %1759 }
 0x26b   : > { %v1762_v58 = vpop.eup %1761  ;;  %v810_v59 = vmul.f32 %v1760_v57, %v1756_v42 }
 0x26c   : > { %v811_v60 = vmul.f32 %v1762_v58, %v1758_v48 }
 0x26d   : > { %v812_v62 = vsel %vm773_vm3, %v810_v59, 0.0 }
 0x26e   : > { %v813_v0 = vsel %vm773_vm3, %v811_v60, 0.0 }
 0x26f   : > { %v814_v8 = vadd.f32 %v813_v0, %v812_v62 }
 0x271   : > { %v815_v10 = vrot.slane %v814_v8, 4 }
 0x273   : > { %v816_v11 = vadd.f32 %v815_v10, %v814_v8 }
 0x275   : > { %v817_v12 = vrot.slane %v816_v11, 2 }
 0x277   : > { %v818_v13 = vadd.f32 %v817_v12, %v816_v11 }
 0x279   : > { %v819_v14 = vrot.slane %v818_v13, 1 }
 0x27b   : > { %v820_v15 = vadd.f32 %v819_v14, %v818_v13 }
 0x27d   : > { %v821_v16 = vmax.f32 %v820_v15, 1e-30 }
 0x27f   : > { %1763 = vrcp.f32 %v821_v16 }
 0x28c   : > { %v1764_v17 = vpop.eup %1763 }
 0x28d   : > { %v823_v18 = vmul.f32 %v1764_v17, %v810_v59  ;;  %v824_v19 = vmul.f32 %v1764_v17, %v811_v60 }
 0x28f   : > { %v825_v20 = vpack.c.bf16 %v824_v19, %v823_v18 }
 0x291   : > { %870 = vxpose.xlu0.c.b16.start.end [1/1] (short) (narrow) %v825_v20, 16 }
 0x2e3   : > { %v795_v21 = vpop.xlane.xlu1 %794 }
 0x2e4   : > { %1765 = vrcp.f32 %v795_v21 }
 0x2e7   : > { %v798_v22 = vpop.xlane.xlu1 %797 }
 0x2e8   : > { %1767 = vrcp.f32 %v798_v22 }
 0x2f1   : > { %v1766_v23 = vpop.eup %1765 }
 0x2f2   : > { %v801_v27 = vmul.f32 %v1766_v23, %v1756_v42 }
 0x2f3   : > { %v878_v24 = vpop.trf.xlu0 }
 0x2f4   : > { %1637 = vmatmul.mubr.msk.bf16.vlgmr.msra.gmra.mxu0 %vm773_vm3, %v878_v24 }
 0x2f5   : > { %v1768_v25 = vpop.eup %1767 }
 0x2f6   : > { %v802_v26 = vmul.f32 %v1768_v25, %v1758_v48 }
 0x2f8   : > { %v803_v28 = vpack.c.bf16 %v802_v26, %v801_v27 }
 0x2fa   : > { %1631 = vmatmul.mubr.msk.bf16.vlgmr.msra.gmra.mxu1 %vm773_vm3, %v803_v28 }
 0x3b4   : > { %v923_v29 = vpop.f32.mrf.mxu0 }
 0x3b6   : > { %v1638_v30 = vpop.f32.mrf.mxu0 }
 0x3b8   : > { %v926_v31 = vpop.f32.mrf.mxu0 }
 0x3b9   : > { %v931_v32 = vpack.c.bf16 %v926_v31, %v923_v29 }
 0x3ba   : > { %v863_v33 = vpop.f32.mrf.mxu1  ;;  %v1639_v34 = vpop.f32.mrf.mxu0 }
 0x3bc   : > { %v1632_v35 = vpop.f32.mrf.mxu1  ;;  %935 = sbr.rel (%p1543_p0) target bundleno = 964 (0x3c4), region = 80 }
 0x3be   : > { %v866_v36 = vpop.f32.mrf.mxu1 }
 0x3bf   : > { %v930_v37 = vpack.c.bf16 %v866_v36, %v863_v33 }
 0x3c0   : > { %v1633_v38 = vpop.f32.mrf.mxu1 }
 0x3c1   : > { %v1544_v39 = vld [vmem:[%s2263_s6] ss:$0 sm:$0xff] }
 0x3c2   : > { %943 = vst.msk [vmem:[#allocation2] sm:$0xff] %vm593_vm0, %v1544_v39  ;;  %944 = vst.msk [vmem:[#allocation2 + $0x8] sm:$0xff] %vm593_vm0, %v1544_v39 }
 0x3c3   : > { %945 = vst.msk [vmem:[#allocation2 + $0x10] sm:$0xff] %vm593_vm0, %v1544_v39  ;;  %946 = vst.msk [vmem:[#allocation2 + $0x18] sm:$0xff] %vm593_vm0, %v1544_v39 }
 0x3c4 PF: > { %v951_v40 = vld [vmem:[%s2057_s20] sm:$0xf]  ;;  %vm958_vm4 = vcmask 1043456   ;;  %1642 = vmatprep.mubr.msk.bf16.mxu1 %vm725_vm2, %v930_v37  ;;  %p1547_p1 = scmp.ne.s32.totalorder %s1869_s16, 3 }
 0x3c5   : > { %1674 = vmatprep.subr.msk.bf16.mxu1 %vm958_vm4, %v951_v40  ;;  %v960_v41 = vsel %vm958_vm4, %v951_v40, 0 }
 0x3c6   : > { %1641 = vmatpush3.bf16.msra.mxu1 %v960_v41 }
 0x3c9   : > { %1643 = vmatmul.mubr.msk.bf16.vlgmr.msra.gmra.mxu1 %vm725_vm2, %v931_v32  ;;  %v947_v44 = vld [vmem:[#allocation2] sm:$0xff]  ;;  %v948_v50 = vld [vmem:[#allocation2 + $0x8] sm:$0xff] }
 0x3ca   : > { %v949_v42 = vld [vmem:[#allocation2 + $0x10] sm:$0xff]  ;;  %v950_v47 = vld [vmem:[#allocation2 + $0x18] sm:$0xff] }
 0x489   : > { %v1644_v43 = vpop.f32.mrf.mxu1 }
 0x48a   : > { %v1013_v45 = vadd.f32 %v1644_v43, %v949_v42 }
 0x48b   : > { %v996_v46 = vpop.f32.mrf.mxu1 }
 0x48c   : > { %1017 = vst.msk [vmem:[#allocation2 + $0x10] sm:$0xff] %vm593_vm0, %v1013_v45  ;;  %v1011_v48 = vadd.f32 %v996_v46, %v947_v44 }
 0x48d   : > { %v1645_v49 = vpop.f32.mrf.mxu1 }
 0x48e   : > { %1015 = vst.msk [vmem:[#allocation2] sm:$0xff] %vm593_vm0, %v1011_v48  ;;  %v1014_v51 = vadd.f32 %v1645_v49, %v950_v47  ;;  %1022 = sbr.rel (%p1547_p1) target bundleno = 1930 (0x78a), region = 84 }
 0x48f   : > { %v999_v52 = vpop.f32.mrf.mxu1 }
 0x490   : > { %1018 = vst.msk [vmem:[#allocation2 + $0x18] sm:$0xff] %vm593_vm0, %v1014_v51  ;;  %v1012_v53 = vadd.f32 %v999_v52, %v948_v50 }
 0x492   : > { %1016 = vst.msk [vmem:[#allocation2 + $0x8] sm:$0xff] %vm593_vm0, %v1012_v53 }
 0x493   : > { %v1769_v54 = vld [vmem:[%s2265_s8 + $0x8] sm:$0xff]   ;;  %v1770_v55 = vld [vmem:[%s2265_s8] sm:$0xff]   ;;  %v1025_v58 = vld [vmem:[#allocation2 + $0x10] sm:$0xff]  ;;  %vm1176_vm5 = vcmask 523264  }
 0x494   : > { %1646 = vmatprep.subr.bf16.mxu1 %v1769_v54  ;;  %v1771_v61 = vld [vmem:[%s2264_s7 + $0x8] sm:$0xff]   ;;  %v1772_v63 = vld [vmem:[%s2264_s7] sm:$0xff]   ;;  %v1773_v45 = vld [vmem:[%s2269_s12 + $0x18] sm:$0xff]  }
 0x495   : > { %v1023_v56 = vld [vmem:[#allocation2] sm:$0xff]  ;;  %1647 = vmatpush3.bf16.msra.mxu1 %v1769_v54  ;;  %v1774_v46 = vld [vmem:[%s2269_s12 + $0x10] sm:$0xff]   ;;  %1662 = vmatprep.subr.bf16.mxu0 %v1773_v45  ;;  %v1775_v47 = vld [vmem:[%s2269_s12 + $0x8] sm:$0xff]  }
 0x496   : > { %1648 = vmatprep.subr.bf16.mxu1 %v1770_v55  ;;  %v1556_v11 = vld [vmem:[%s2266_s9] ss:$0 sm:$0xff]  ;;  %1663 = vmatpush3.bf16.msra.mxu0 %v1773_v45 }
 0x497   : > { %v1026_v60 = vld [vmem:[#allocation2 + $0x18] sm:$0xff]  ;;  %1664 = vmatprep.subr.bf16.mxu0 %v1774_v46  ;;  %v1776_v48 = vld [vmem:[%s2269_s12] sm:$0xff]  }
 0x498   : > { %v1032_v62 = vpack.c.bf16 %v1026_v60, %v1025_v58 }
 0x499   : > { %v1024_v57 = vld [vmem:[#allocation2 + $0x8] sm:$0xff]  ;;  %1649 = vmatpush3.bf16.msra.mxu1 %v1770_v55 }
 0x49a   : > { %v1031_v59 = vpack.c.bf16 %v1024_v57, %v1023_v56  ;;  %1654 = vmatprep.subr.bf16.mxu1 %v1771_v61  ;;  %1665 = vmatpush3.bf16.msra.mxu0 %v1774_v46 }
 0x49b   : > { %1666 = vmatprep.subr.bf16.mxu0 %v1775_v47 }
 0x49c   : > { %1650 = vmatprep.mubr.msk.bf16.mxu1 %vm593_vm0, %v1031_v59 }
 0x49d   : > { %1651 = vmatmul.mubr.msk.bf16.vlgmr.msra.gmra.mxu1 %vm593_vm0, %v1032_v62  ;;  %v1557_v62 = vld [vmem:[%s2267_s10] ss:$0 sm:$0xff] }
 0x49e   : > { %1655 = vmatpush3.bf16.msra.mxu1 %v1771_v61  ;;  %1658 = vmatprep.mubr.msk.bf16.mxu1 %vm593_vm0, %v2068_v4 }
 0x49f   : > { %1656 = vmatprep.subr.bf16.mxu1 %v1772_v63  ;;  %1667 = vmatpush3.bf16.msra.mxu0 %v1775_v47 }
 0x4a0   : > { %1668 = vmatprep.subr.bf16.mxu0 %v1776_v48 }
 0x4a2   : > { %1657 = vmatpush3.bf16.msra.mxu1 %v1772_v63 }
 0x4a3   : > { %1669 = vmatpush3.bf16.msra.mxu0 %v1776_v48 }
 0x4a5   : > { %1659 = vmatmul.mubr.msk.bf16.vlgmr.msra.gmra.mxu1 %vm593_vm0, %v2080_v7 }
 0x55d   : > { %v1652_v0 = vpop.f32.mrf.mxu1 }
 0x55f   : > { %v1089_v1 = vpop.f32.mrf.mxu1 }
 0x561   : > { %v1653_v8 = vpop.f32.mrf.mxu1 }
 0x563   : > { %v1092_v9 = vpop.f32.mrf.mxu1 }
 0x565   : > { %v1660_v10 = vpop.f32.mrf.mxu1 }
 0x566   : > { %v1159_v12 = vadd.f32 %v1660_v10, %v1652_v0  ;;  %v1558_v0 = vld [vmem:[%s2268_s11] ss:$0 sm:$0xff] }
 0x567   : > { %v1150_v13 = vpop.f32.mrf.mxu1 }
 0x568   : > { %v1151_v14 = vadd.f32 %v1150_v13, %v1089_v1  ;;  %v1174_v15 = vadd.f32 %v1556_v11, %v1159_v12 }
 0x569   : > { %v1661_v4 = vpop.f32.mrf.mxu1 }
 0x56a   : > { %v1162_v16 = vadd.f32 %v1661_v4, %v1653_v8  ;;  %v1183_v17 = vsel %vm1176_vm5, %v1174_v15, 0.0  ;;  %v1172_v18 = vadd.f32 %v1556_v11, %v1151_v14 }
 0x56b   : > { %1184 = vadd.xlane.f32.xlu1 %v1183_v17  ;;  %v1153_v7 = vpop.f32.mrf.mxu1 }
 0x56c   : > { %v1154_v19 = vadd.f32 %v1153_v7, %v1092_v9  ;;  %v1177_v20 = vsel %vm1176_vm5, %v1172_v18, 0.0  ;;  %v1175_v21 = vadd.f32 %v1556_v11, %v1162_v16 }
 0x56d   : > { %1178 = vadd.xlane.f32.xlu0 %v1177_v20 }
 0x56e   : > { %v1186_v22 = vsel %vm1176_vm5, %v1175_v21, 0.0  ;;  %v1173_v23 = vadd.f32 %v1556_v11, %v1154_v19 }
 0x56f   : > { %1187 = vadd.xlane.f32.xlu1 %v1186_v22 }
 0x570   : > { %v1180_v24 = vsel %vm1176_vm5, %v1173_v23, 0.0 }
 0x571   : > { %1181 = vadd.xlane.f32.xlu0 %v1180_v24 }
 0x5f4   : > { %v1185_v25 = vpop.xlane.xlu1 %1184 }
 0x5f5   : > { %v1192_v26 = vmul.f32 0.015625, %v1185_v25 }
 0x5f6   : > { %v1179_v27 = vpop.xlane.xlu0 %1178 }
 0x5f7   : > { %v1190_v28 = vmul.f32 0.015625, %v1179_v27  ;;  %v1196_v30 = vsub.f32 %v1174_v15, %v1192_v26 }
 0x5f8   : > { %v1188_v29 = vpop.xlane.xlu1 %1187 }
 0x5f9   : > { %v1194_v31 = vsub.f32 %v1172_v18, %v1190_v28  ;;  %v1193_v32 = vmul.f32 0.015625, %v1188_v29  ;;  %v1200_v39 = vmul.f32 %v1196_v30, %v1196_v30 }
 0x5fa   : > { %v1182_v33 = vpop.xlane.xlu0 %1181 }
 0x5fb   : > { %v1191_v34 = vmul.f32 0.015625, %v1182_v33  ;;  %v1198_v35 = vmul.f32 %v1194_v31, %v1194_v31  ;;  %v1197_v36 = vsub.f32 %v1175_v21, %v1193_v32  ;;  %v1208_v41 = vsel %vm1176_vm5, %v1200_v39, 0.0 }
 0x5fd   : > { %v1195_v37 = vsub.f32 %v1173_v23, %v1191_v34  ;;  %v1202_v38 = vsel %vm1176_vm5, %v1198_v35, 0.0  ;;  %v1201_v43 = vmul.f32 %v1197_v36, %v1197_v36 }
 0x5fe   : > { %1203 = vadd.xlane.f32.xlu0 %v1202_v38 }
 0x5ff   : > { %v1199_v40 = vmul.f32 %v1195_v37, %v1195_v37  ;;  %v1211_v44 = vsel %vm1176_vm5, %v1201_v43, 0.0 }
 0x601   : > { %v1205_v42 = vsel %vm1176_vm5, %v1199_v40, 0.0 }
 0x602   : > { %1209 = vadd.xlane.f32.xlu0 %v1208_v41  ;;  %1206 = vadd.xlane.f32.xlu1 %v1205_v42  ;;  %v1559_v41 = vld [vmem:[%s2270_s13] ss:$0 sm:$0xff] }
 0x606   : > { %1212 = vadd.xlane.f32.xlu1 %v1211_v44 }
 0x687   : > { %v1204_v49 = vpop.xlane.xlu0 %1203 }
 0x688   : > { %v1214_v50 = vmul.f32 0.015625, %v1204_v49 }
 0x68a   : > { %v1218_v51 = vadd.f32 1e-05, %v1214_v50 }
 0x68b   : > { %v1207_v52 = vpop.xlane.xlu1 %1206  ;;  %v1210_v53 = vpop.xlane.xlu0 %1209 }
 0x68c   : > { %1777 = vrsqrt.f32 %v1218_v51  ;;  %v1215_v54 = vmul.f32 0.015625, %v1207_v52  ;;  %v1216_v55 = vmul.f32 0.015625, %v1210_v53 }
 0x68e   : > { %v1219_v56 = vadd.f32 1e-05, %v1215_v54  ;;  %v1220_v57 = vadd.f32 1e-05, %v1216_v55 }
 0x68f   : > { %v1213_v58 = vpop.xlane.xlu1 %1212 }
 0x690   : > { %1779 = vrsqrt.f32 %v1219_v56  ;;  %v1217_v59 = vmul.f32 0.015625, %v1213_v58 }
 0x691   : > { %1781 = vrsqrt.f32 %v1220_v57 }
 0x692   : > { %v1221_v60 = vadd.f32 1e-05, %v1217_v59 }
 0x694   : > { %1783 = vrsqrt.f32 %v1221_v60 }
 0x699   : > { %v1778_v61 = vpop.eup %1777 }
 0x69a   : > { %v1226_v63 = vmul.f32 %v1778_v61, %v1194_v31 }
 0x69c   : > { %v1237_v1 = vmul.f32 %v1557_v62, %v1226_v63 }
 0x69d   : > { %v1780_v8 = vpop.eup %1779 }
 0x69e   : > { %v1782_v9 = vpop.eup %1781  ;;  %v1227_v10 = vmul.f32 %v1780_v8, %v1195_v37  ;;  %v1248_v11 = vadd.f32 %v1558_v0, %v1237_v1 }
 0x69f   : > { %v1228_v12 = vmul.f32 %v1782_v9, %v1196_v30 }
 0x6a0   : > { %v1238_v13 = vmul.f32 %v1557_v62, %v1227_v10  ;;  %v1256_v14 = vmul.f32 0.70710677, %v1248_v11  ;;  %v1252_v27 = vmul.f32 0.5, %v1248_v11 }
 0x6a1   : > { %v1784_v15 = vpop.eup %1783  ;;  %v1239_v4 = vmul.f32 %v1557_v62, %v1228_v12 }
 0x6a2   : > { %v1229_v16 = vmul.f32 %v1784_v15, %v1197_v36  ;;  %v1249_v17 = vadd.f32 %v1558_v0, %v1238_v13  ;;  %1785 = verf.f32 %v1256_v14 }
 0x6a3   : > { %v1250_v18 = vadd.f32 %v1558_v0, %v1239_v4 }
 0x6a4   : > { %v1257_v7 = vmul.f32 0.70710677, %v1249_v17  ;;  %v1240_v19 = vmul.f32 %v1557_v62, %v1229_v16  ;;  %v1253_v28 = vmul.f32 0.5, %v1249_v17 }
 0x6a5   : > { %v1258_v20 = vmul.f32 0.70710677, %v1250_v18  ;;  %v1254_v35 = vmul.f32 0.5, %v1250_v18 }
 0x6a6   : > { %1787 = verf.f32 %v1257_v7  ;;  %v1251_v21 = vadd.f32 %v1558_v0, %v1240_v19 }
 0x6a7   : > { %1789 = verf.f32 %v1258_v20 }
 0x6a8   : > { %v1259_v22 = vmul.f32 0.70710677, %v1251_v21  ;;  %v1255_v36 = vmul.f32 0.5, %v1251_v21 }
 0x6aa   : > { %1791 = verf.f32 %v1259_v22 }
 0x6af   : > { %v1786_v23 = vpop.eup %1785 }
 0x6b0   : > { %v1264_v24 = vadd.f32 1.0, %v1786_v23 }
 0x6b2   : > { %v1268_v30 = vmul.f32 %v1264_v24, %v1252_v27 }
 0x6b3   : > { %v1788_v25 = vpop.eup %1787 }
 0x6b4   : > { %v1790_v26 = vpop.eup %1789  ;;  %v1265_v29 = vadd.f32 1.0, %v1788_v25 }
 0x6b5   : > { %v1266_v32 = vadd.f32 1.0, %v1790_v26 }
 0x6b6   : > { %v1269_v31 = vmul.f32 %v1265_v29, %v1253_v28 }
 0x6b7   : > { %v1792_v33 = vpop.eup %1791  ;;  %v1270_v38 = vmul.f32 %v1266_v32, %v1254_v35 }
 0x6b8   : > { %v1272_v34 = vpack.c.bf16 %v1269_v31, %v1268_v30  ;;  %v1267_v37 = vadd.f32 1.0, %v1792_v33 }
 0x6ba   : > { %1670 = vmatprep.mubr.msk.bf16.mxu0 %vm1176_vm5, %v1272_v34  ;;  %v1271_v39 = vmul.f32 %v1267_v37, %v1255_v36 }
 0x6bc   : > { %v1273_v40 = vpack.c.bf16 %v1271_v39, %v1270_v38 }
 0x6be   : > { %1671 = vmatmul.mubr.msk.bf16.vlgmr.msra.gmra.mxu0 %vm1176_vm5, %v1273_v40 }
 0x77e   : > { %v1672_v42 = vpop.f32.mrf.mxu0 }
 0x77f   : > { %v1362_v43 = vadd.f32 %v1672_v42, %v1559_v41 }
 0x780   : > { %v1353_v44 = vpop.f32.mrf.mxu0 }
 0x781   : > { %v1370_v45 = vadd.f32 %v1362_v43, %v2070_v5  ;;  %v1354_v46 = vadd.f32 %v1559_v41, %v1353_v44 }
 0x782   : > { %v1673_v47 = vpop.f32.mrf.mxu0 }
 0x783   : > { %1374 = vst.msk [vmem:[%s2113_s18 + $0x10] sm:$0xff] %vm593_vm0, %v1370_v45  ;;  %v1368_v48 = vadd.f32 %v1354_v46, %v2062_v2  ;;  %v1365_v49 = vadd.f32 %v1673_v47, %v1559_v41 }
 0x784   : > { %v1356_v50 = vpop.f32.mrf.mxu0 }
 0x785   : > { %1372 = vst.msk [vmem:[%s2113_s18] sm:$0xff] %vm593_vm0, %v1368_v48  ;;  %v1371_v51 = vadd.f32 %v1365_v49, %v2072_v6  ;;  %v1357_v52 = vadd.f32 %v1559_v41, %v1356_v50 }
 0x787   : > { %1375 = vst.msk [vmem:[%s2113_s18 + $0x18] sm:$0xff] %vm593_vm0, %v1371_v51  ;;  %v1369_v53 = vadd.f32 %v1357_v52, %v2064_v3 }
 0x789   : > { %1373 = vst.msk [vmem:[%s2113_s18 + $0x8] sm:$0xff] %vm593_vm0, %v1369_v53 }
 0x78a PF: > { %s2299_s24 = sld [smem:[#allocation7_spill]]  ;;  %s1574_s26 = sshll.u32 %s1873_s17, 9 }
 0x78b   : > { %s2301_s27 = sld [smem:[#allocation17_spill]]  ;;  %s1390_s23 = sshll.u32 %s2113_s18, 4  ;;  %s2202_s23 = int_to_ptr.vmem [resolvable:$true] %s1390_s23 }
 0x78c   : > { %s1793_s29 = scalar_lea.vmem %s2202_s23, 512  ;;  %s1889_s17 = smov [#allocation3]  }
 0x78d   : > { %p1794_p2 = scmp.ne.s32.totalorder %s2202_s23, %s1793_s29  ;;  %s1797_s30 = sshll.u32 %s1889_s17, 4  ;;  %s1798_s30 = int_to_ptr.vmem [resolvable:$false] %s1797_s30 }
 0x78e   : > { %s1799_s16 = scalar_lea.vmem %s1798_s30, 1024  ;;  %p1800_p6 = scmp.lt.s32.totalorder %s2202_s23, %s1798_s30 }
 0x78f   : > { %p1795_p4 = pnand %p1794_p2, %p2016_p3  ;;  %p1801_p7 = scmp.lt.s32.totalorder %s1799_s16, %s1793_s29 }
 0x790   : > { %s2302_s28 = sand.u32 1, %s2299_s24  }
 0x791   : > { %s2199_s20 = scalar_lea.hbm %s2301_s27, %s1574_s26  ;;  %s2206_s14 = scalar_lea.sflag [#allocation4], %s2302_s28 }
 0x792   : > { %p1796_p5 = pneg %p1795_p4  ;;  %p1802_p8 = por %p1801_p7, %p1800_p6 }
 0x794   : > { %p1803_p10 = pnand %p1802_p8, %p1796_p5 }
 0x796   : > { %1806 = shalt.err (!%p1803_p10)
}
 0x797   : > { %s1807_s18 = scalar_lea.hbm %s2199_s20, 512  ;;  %s1811_s24 = scalar_lea.hbm %s2301_s27, 1024 }
 0x798   : > { %p1808_p11 = scmp.ne.s32.totalorder %s2199_s20, %s1807_s18  ;;  %p1812_p0 = scmp.lt.s32.totalorder %s2199_s20, %s2301_s27 }
 0x799   : > { %p1813_p1 = scmp.lt.s32.totalorder %s1811_s24, %s1807_s18 }
 0x79a   : > { %p1809_p12 = pnand %p1808_p11, %p2016_p3 }
 0x79b   : > { %p1814_p2 = por %p1813_p1, %p1812_p0 }
 0x79c   : > { %p1810_p13 = pneg %p1809_p12 }
 0x79e   : > { %p1815_p4 = pnand %p1814_p2, %p1810_p13 }
 0x7a0   : > { %1818 = shalt.err (!%p1815_p4)
}
 0x7a1   : > { %s1890_s22 = smov 128   ;;  %s1891_s28 = smov 8  }
 0x7a2   : > { %1675 = dma.vmem_to_hbm [thread:$0]  (%p2016_p3), %s2202_s23, 512, %s2199_s20, %s2206_s14, %s1890_s22, %s1890_s22, %s1891_s28  }
 0x7a3 PF: > { %s2303_s29 = sld [smem:[#allocation11_spill]] }
 0x7a4   : > { %s2304_s17 = sld [smem:[#allocation6_spill]] }
 0x7a9   : > { %p1681_p5 = scmp.ge.s32.totalorder %s2303_s29, 2 }
 0x7aa   : > { %s1405_s16 = sand.u32 1, %s2304_s17  }
 0x7ab   : > { %p1678_p6 = pnand %p1681_p5, %p2026_p9  ;;  %s1406_s18 = scalar_lea.sflag [#allocation4], %s1405_s16 }
 0x7ad   : > { %p1679_p7 = pneg %p1678_p6 }
 0x7af   : > { %1852 = dma.done.wait (%p1679_p7), %s1406_s18, 512  }
 0x7b0   : > { %1854 = vsyncadd (%p1679_p7), %s1406_s18, 4294966784  ;;  %s27_s20 = sadd.s32 1, %s2303_s29   ;;  %s2306_s29 = sld [smem:[#allocation7_spill]] }
 0x7b1   : > { %p24_p8 = scmp.ge.s32.totalorder %s27_s20, 10   ;;  %s2307_s30 = sld [smem:[#allocation8_spill]] }
 0x7b2   : > { %s2308_s15 = sld [smem:[#allocation16_spill]] }
 0x7b3   : > { %s2309_s16 = sld [smem:[#allocation9_spill]]  ;;  %26 = sbr.rel (!%p24_p8) target bundleno = 7 (0x7), region = 134 }
 0x7b4   : > { %s2310_s17 = sld [smem:[#allocation10_spill]] }
 0x7b5   : > { %s2311_s18 = sld [smem:[#allocation12_spill]] }
 0x7b6   : > { %s2312_s19 = sld [smem:[#allocation14_spill]] }
 0x7b8   :  { %1411 = vsyncpa [#allocation4], 1 }
 0x7b9   :  { %1413 = vsyncpa [#allocation4 + $0x1], 1 }

// kernel: tpu_custom_call.1
= control target key start
LH: loop header
LB: loop body
LE: loop exit
PB: predicated region body
PF: predicated region fallthrough
CT: control target
= control target key end

     0   :  { %s2257_s0 = inlined_call_operand.vmem [shape: f32[2,32,32], index: 0, kind: input, shape index: {}]   ;;  %s2258_s1 = inlined_call_operand.vmem [shape: bf16[4,32,8], index: 1, kind: input, shape index: {}]   ;;  %s2259_s2 = inlined_call_operand.vmem [shape: f32[4,1,8], index: 2, kind: input, shape index: {}]   ;;  %s2260_s3 = inlined_call_operand.vmem [shape: bf16[4,32,8], index: 3, kind: input, shape index: {}]   ;;  %s2261_s4 = inlined_call_operand.vmem [shape: f32[4,1,8], index: 4, kind: input, shape index: {}]   ;;  %s2262_s5 = inlined_call_operand.vmem [shape: bf16[4,8,32], index: 5, kind: input, shape index: {}]   ;;  %s2263_s6 = inlined_call_operand.vmem [shape: f32[1,32], index: 6, kind: input, shape index: {}]   ;;  %s2264_s7 = inlined_call_operand.vmem [shape: bf16[32,64], index: 7, kind: input, shape index: {}]   ;;  %s2265_s8 = inlined_call_operand.vmem [shape: bf16[32,64], index: 8, kind: input, shape index: {}]   ;;  %s2266_s9 = inlined_call_operand.vmem [shape: f32[1,64], index: 9, kind: input, shape index: {}]   ;;  %s2267_s10 = inlined_call_operand.vmem [shape: f32[1,64], index: 10, kind: input, shape index: {}]   ;;  %s2268_s11 = inlined_call_operand.vmem [shape: f32[1,64], index: 11, kind: input, shape index: {}]   ;;  %s2269_s12 = inlined_call_operand.vmem [shape: bf16[64,32], index: 12, kind: input, shape index: {}]   ;;  %s2270_s13 = inlined_call_operand.vmem [shape: f32[1,32], index: 13, kind: input, shape index: {}]   ;;  %s2271_s14 = inlined_call_operand.hbm [shape: f32[2,32,32], index: 14, kind: output, shape index: {}]  }
   0x1   :  { %2285 = sst [smem:[#allocation17_spill]] %s2271_s14 }
   0x2   :  { %19 = vsyncpa [#allocation4], 0 }
   0x3   :  { %21 = vsyncpa [#allocation4 + $0x1], 0  ;;  %s1967_s29 = smov 0   ;;  %s1969_s30 = smov 0  }
   0x4   :  { %s1971_s15 = smov 0   ;;  %s1973_s16 = smov 0  }
   0x5   :  { %s1975_s17 = smov 0   ;;  %s1977_s18 = smov 0  }
   0x6   :  { %s1979_s19 = smov 0   ;;  %s1981_s20 = smov 0  }
   0x7 LB: > { %2286 = sst [smem:[#allocation6_spill]] %s1857_s29  ;;  %s1517_s21 = sadd.s32 4294967295, %s1885_s20   ;;  %s1885_s20 = sphi %s1981_s20, %s27_s20   ;;  %s1881_s19 = sphi %s1979_s19, %s2312_s19   ;;  %s1877_s18 = sphi %s1977_s18, %s2311_s18   ;;  %s1873_s17 = sphi %s1975_s17, %s2310_s17   ;;  %s1869_s16 = sphi %s1973_s16, %s2309_s16   ;;  %s1865_s15 = sphi %s1971_s15, %s2308_s15   ;;  %s1861_s30 = sphi %s1969_s30, %s2307_s30   ;;  %s1857_s29 = sphi %s1967_s29, %s2306_s29  }
   0x8   : > { %2287 = sst [smem:[#allocation7_spill]] %s1861_s30  ;;  %s1518_s22 = sadd.s32 4294967294, %s1885_s20  }
   0x9   : > { %2288 = sst [smem:[#allocation8_spill]] %s1865_s15  ;;  %s36_s23 = sadd.s32 1, %s1877_s18 }
   0xa   : > { %2289 = sst [smem:[#allocation9_spill]] %s1877_s18  ;;  %p37_p0 = scmp.ge.s32.totalorder %s36_s23, 4 }
   0xb   : > { %2290 = sst [smem:[#allocation10_spill]] %s1881_s19  ;;  %s39_s24 = sadd.s32 1, %s1881_s19 }
   0xc   : > { %2291 = sst [smem:[#allocation11_spill]] %s1885_s20  ;;  %p380_p1 = scmp.ne.s32.totalorder %s1865_s15, %s1861_s30 }
   0xd   : > { %p381_p2 = scmp.eq.s32.totalorder %s1517_s21, 7  ;;  %s2314_s23 = smov (%p37_p0, %s36_s23), 0 }
   0xe   : > { %2292 = sst [smem:[#allocation12_spill]] %s2314_s23  ;;  %s2316_s24 = smov (!%p37_p0, %s39_s24), %s1881_s19 }
   0xf   : > { %p2016_p3 = por %p381_p2, %p380_p1  ;;  %p386_p4 = scmp.ne.s32.totalorder %s1861_s30, %s1857_s29 }
  0x10   : > { %p41_p5 = scmp.ge.s32.totalorder %s2316_s24, 2  ;;  %p387_p6 = scmp.eq.s32.totalorder %s1518_s22, 7 }
  0x11   : > { %s2293_s25 = scalar_select %p2016_p3, 1, 0 }
  0x12   : > { %p1521_p7 = scmp.ge.s32.totalorder %s1885_s20, 1  ;;  %p472_p8 = scmp.lt.s32.totalorder %s1885_s20, 9 }
  0x13   : > { %2294 = sst [smem:[#allocation13_spill]] %s2293_s25  ;;  %s2318_s24 = smov (%p41_p5, %s2316_s24), 0 }
  0x14   : > { %2295 = sst [smem:[#allocation14_spill]] %s2318_s24  ;;  %p2026_p9 = por %p387_p6, %p386_p4 }
  0x15   : > { %p473_p10 = pnand %p1521_p7, %p472_p8  ;;  %s367_s27 = ssub.s32 %s1881_s19, %s2318_s24 }
  0x16   : > { %s2296_s26 = scalar_select %p2026_p9, 1, 0 }
  0x17   : > { %s370_s28 = sadd.s32 1, %s1865_s15  ;;  %p368_p11 = scmp.eq.s32.totalorder %s367_s27, 0 }
  0x18   : > { %2297 = sst [smem:[#allocation15_spill]] %s2296_s26  ;;  %476 = sbr.rel (%p473_p10) target bundleno = 1955 (0x7a3), region = 76 }
  0x19   : > { %s2034_s21 = scalar_select %p368_p11, %s1865_s15, %s370_s28  }
  0x1a   : > { %s2280_s22 = sand.u32 (!%p473_p10), 1, %s1861_s30   ;;  %p543_p12 = scmp.lt.s32.totalorder (!%p473_p10), %s1869_s16, 3 }
  0x1b   : > { %2298 = sst [smem:[#allocation16_spill]] %s2034_s21  ;;  %s2040_s23 = sshll.u32 (!%p473_p10), %s2280_s22, 5 }
  0x1c   : > { %p538_p13 = scmp.lt.s32.totalorder (!%p473_p10), %s1873_s17, 1  ;;  %p1543_p0 = scmp.ne.s32.totalorder (!%p473_p10), %s1869_s16, 0 }
  0x1d   : > { %s2044_s18 = scalar_select %p543_p12, %s1869_s16, 3  ;;  %vm593_vm0 = vcmask 261120   ;;  %v1887_v8 = vmov 0.0   ;;  %vm1888_vm1 = vmmov 0   ;;  %vm725_vm2 = vcmask 64512  }
  0x1e   : > { %s539_s27 = scalar_select %p538_p13, %s1873_s17, 1  ;;  %vm773_vm3 = vcmask 130048  }
  0x1f   : > { %s1572_s28 = sshll.u32 %s2044_s18, 4  ;;  %s1529_s24 = sshll.u32 %s2044_s18, 2 }
  0x20   : > { %s547_s15 = scalar_lea.vmem %s2258_s1, %s1572_s28  ;;  %s2057_s20 = scalar_lea.vmem %s2262_s5, %s1529_s24 }
  0x21   : > { %v1751_v0 = vld [vmem:[%s547_s15 + $0x8] sm:$0xff]   ;;  %s1571_s22 = sshll.u32 %s539_s27, 5  ;;  %v1752_v1 = vld [vmem:[%s547_s15] sm:$0xff]   ;;  %s555_s24 = scalar_lea.vmem %s2260_s3, %s1572_s28 }
  0x22   : > { %s542_s30 = scalar_lea.vmem %s2257_s0, %s1571_s22  ;;  %1606 = vmatprep.subr.bf16.mxu0 %v1751_v0  ;;  %v1753_v21 = vld [vmem:[%s555_s24 + $0x8] sm:$0xff]   ;;  %v1754_v22 = vld [vmem:[%s555_s24] sm:$0xff]   ;;  %s558_s21 = scalar_lea.vmem %s2261_s4, %s2044_s18 }
  0x23   : > { %v2062_v2 = vld [vmem:[%s542_s30] sm:$0xff]  ;;  %v2064_v3 = vld [vmem:[%s542_s30 + $0x8] sm:$0xff]  ;;  %1607 = vmatpush3.bf16.msra.mxu0 %v1751_v0  ;;  %v2070_v5 = vld [vmem:[%s542_s30 + $0x10] sm:$0xff]  ;;  %1614 = vmatprep.subr.bf16.mxu1 %v1753_v21 }
  0x24   : > { %v2068_v4 = vpack.c.bf16 %v2064_v3, %v2062_v2  ;;  %v2072_v6 = vld [vmem:[%s542_s30 + $0x18] sm:$0xff]  ;;  %1608 = vmatprep.subr.bf16.mxu0 %v1752_v1  ;;  %s550_s30 = scalar_lea.vmem %s2259_s2, %s2044_s18  ;;  %1615 = vmatpush3.bf16.msra.mxu1 %v1753_v21  ;;  %v1535_v51 = vld [vmem:[%s558_s21] ss:$0 sm:$0xff]  ;;  %s2113_s18 = scalar_lea.vmem [#allocation3], %s2040_s23 }
  0x25   : > { %v2080_v7 = vpack.c.bf16 %v2072_v6, %v2070_v5  ;;  %v1530_v10 = vld [vmem:[%s550_s30] ss:$0 sm:$0xff]  ;;  %1616 = vmatprep.subr.bf16.mxu1 %v1754_v22 }
  0x26   : > { %1610 = vmatprep.mubr.msk.bf16.mxu0 %vm593_vm0, %v2068_v4  ;;  %1618 = vmatprep.mubr.msk.bf16.mxu1 %vm593_vm0, %v2068_v4 }
  0x27   : > { %1609 = vmatpush3.bf16.msra.mxu0 %v1752_v1 }
  0x28   : > { %1622 = vmatprep.subr.bf16.mxu0 %v1887_v8  ;;  %1617 = vmatpush3.bf16.msra.mxu1 %v1754_v22 }
  0x29   : > { %1628 = vmatprep.subr.bf16.mxu1 %v1887_v8 }
  0x2a   : > { %1611 = vmatmul.mubr.msk.bf16.vlgmr.msra.gmra.mxu0 %vm593_vm0, %v2080_v7 }
  0x2b   : > { %1624 = vmatprep.mubr.msk.bf16.mxu0 %vm1888_vm1, %v1887_v8  ;;  %1619 = vmatmul.mubr.msk.bf16.vlgmr.msra.gmra.mxu1 %vm593_vm0, %v2080_v7 }
  0x2c   : > { %1630 = vmatprep.mubr.msk.bf16.mxu1 %vm1888_vm1, %v1887_v8 }
  0xea   : > { %v1612_v9 = vpop.f32.mrf.mxu0 }
  0xeb   : > { %v643_v13 = vadd.f32 %v1612_v9, %v1530_v10  ;;  %v1620_v50 = vpop.f32.mrf.mxu1 }
  0xec   : > { %v634_v11 = vpop.f32.mrf.mxu0  ;;  %v715_v53 = vadd.f32 %v1620_v50, %v1535_v51 }
  0xed   : > { %v635_v19 = vadd.f32 %v1530_v10, %v634_v11  ;;  %v706_v52 = vpop.f32.mrf.mxu1 }
  0xee   : > { %v1613_v12 = vpop.f32.mrf.mxu0  ;;  %v707_v61 = vadd.f32 %v1535_v51, %v706_v52 }
  0xef   : > { %v646_v14 = vadd.f32 %v1613_v12, %v1530_v10  ;;  %v1621_v54 = vpop.f32.mrf.mxu1 }
  0xf0   : > { %v637_v16 = vpop.f32.mrf.mxu0  ;;  %v718_v55 = vadd.f32 %v1621_v54, %v1535_v51 }
  0xf1   : > { %v722_v15 = vpack.c.bf16 %v646_v14, %v643_v13  ;;  %v638_v18 = vadd.f32 %v1530_v10, %v637_v16  ;;  %v709_v63 = vpop.f32.mrf.mxu1 }
  0xf2   : > { %v724_v56 = vpack.c.bf16 %v718_v55, %v715_v53  ;;  %v710_v1 = vadd.f32 %v1535_v51, %v709_v63 }
  0xf3   : > { %v730_v17 = vsel %vm725_vm2, %v722_v15, 0  ;;  %v721_v20 = vpack.c.bf16 %v638_v18, %v635_v19 }
  0xf4   : > { %1623 = vmatpush3.bf16.xpose.msra.mxu0 %v730_v17  ;;  %1629 = vmatpush3.bf16.msra.mxu1 %v724_v56  ;;  %v723_v9 = vpack.c.bf16 %v710_v1, %v707_v61 }
  0xf5   : > { %1634 = vmatprep.subr.bf16.mxu0 %v1887_v8 }
  0xfb   : > { %1625 = vmatmul.mubr.msk.bf16.vlgmr.msra.gmra.mxu0 %vm725_vm2, %v721_v20 }
  0xfc   : > { %1636 = vmatprep.mubr.msk.bf16.mxu0 %vm1888_vm1, %v1887_v8  ;;  %1635 = vmatpush3.bf16.msra.mxu0 %v723_v9 }
 0x1bb   : > { %v766_v23 = vpop.f32.mrf.mxu0 }
 0x1bc   : > { %v774_v24 = vsel %vm773_vm3, %v766_v23, -inf }
 0x1bd   : > { %775 = vmax.xlane.f32.xlu0 %v774_v24  ;;  %v1626_v25 = vpop.f32.mrf.mxu0 }
 0x1bf   : > { %v769_v26 = vpop.f32.mrf.mxu0 }
 0x1c0   : > { %v777_v27 = vsel %vm773_vm3, %v769_v26, -inf }
 0x1c1   : > { %778 = vmax.xlane.f32.xlu0 %v777_v27  ;;  %v1627_v28 = vpop.f32.mrf.mxu0 }
 0x246   : > { %v776_v29 = vpop.xlane.xlu0 %775 }
 0x247   : > { %v787_v30 = vsub.f32 %v766_v23, %v776_v29 }
 0x249   : > { %v789_v31 = vmul.f32 1.442695, %v787_v30 }
 0x24a   : > { %v779_v32 = vpop.xlane.xlu0 %778 }
 0x24b   : > { %1755 = vpow2.f32 %v789_v31  ;;  %v780_v33 = vmax.f32 %v776_v29, %v779_v32  ;;  %v788_v34 = vsub.f32 %v769_v26, %v779_v32 }
 0x24d   : > { %v781_v35 = vrot.slane %v780_v33, 4  ;;  %v791_v36 = vmul.f32 1.442695, %v788_v34 }
 0x24f   : > { %v782_v37 = vmax.f32 %v780_v33, %v781_v35  ;;  %1757 = vpow2.f32 %v791_v36 }
 0x251   : > { %v783_v38 = vrot.slane %v782_v37, 2 }
 0x253   : > { %v784_v39 = vmax.f32 %v782_v37, %v783_v38 }
 0x255   : > { %v785_v40 = vrot.slane %v784_v39, 1 }
 0x257   : > { %v786_v41 = vmax.f32 %v784_v39, %v785_v40 }
 0x258   : > { %v1756_v42 = vpop.eup %1755 }
 0x259   : > { %v804_v43 = vsub.f32 %v776_v29, %v786_v41  ;;  %v805_v44 = vsub.f32 %v779_v32, %v786_v41  ;;  %v793_v45 = vsel %vm773_vm3, %v1756_v42, 0.0 }
 0x25a   : > { %794 = vadd.xlane.f32.xlu1 %v793_v45 }
 0x25b   : > { %v806_v46 = vmul.f32 1.442695, %v804_v43  ;;  %v808_v47 = vmul.f32 1.442695, %v805_v44 }
 0x25c   : > { %v1758_v48 = vpop.eup %1757 }
 0x25d   : > { %1759 = vpow2.f32 %v806_v46  ;;  %v796_v49 = vsel %vm773_vm3, %v1758_v48, 0.0 }
 0x25e   : > { %1761 = vpow2.f32 %v808_v47  ;;  %797 = vadd.xlane.f32.xlu1 %v796_v49 }
 0x26a   : > { %v1760_v57 = vpop.eup %1759 }
 0x26b   : > { %v1762_v58 = vpop.eup %1761  ;;  %v810_v59 = vmul.f32 %v1760_v57, %v1756_v42 }
 0x26c   : > { %v811_v60 = vmul.f32 %v1762_v58, %v1758_v48 }
 0x26d   : > { %v812_v62 = vsel %vm773_vm3, %v810_v59, 0.0 }
 0x26e   : > { %v813_v0 = vsel %vm773_vm3, %v811_v60, 0.0 }
 0x26f   : > { %v814_v8 = vadd.f32 %v813_v0, %v812_v62 }
 0x271   : > { %v815_v10 = vrot.slane %v814_v8, 4 }
 0x273   : > { %v816_v11 = vadd.f32 %v815_v10, %v814_v8 }
 0x275   : > { %v817_v12 = vrot.slane %v816_v11, 2 }
 0x277   : > { %v818_v13 = vadd.f32 %v817_v12, %v816_v11 }
 0x279   : > { %v819_v14 = vrot.slane %v818_v13, 1 }
 0x27b   : > { %v820_v15 = vadd.f32 %v819_v14, %v818_v13 }
 0x27d   : > { %v821_v16 = vmax.f32 %v820_v15, 1e-30 }
 0x27f   : > { %1763 = vrcp.f32 %v821_v16 }
 0x28c   : > { %v1764_v17 = vpop.eup %1763 }
 0x28d   : > { %v823_v18 = vmul.f32 %v1764_v17, %v810_v59  ;;  %v824_v19 = vmul.f32 %v1764_v17, %v811_v60 }
 0x28f   : > { %v825_v20 = vpack.c.bf16 %v824_v19, %v823_v18 }
 0x291   : > { %870 = vxpose.xlu0.c.b16.start.end [1/1] (short) (narrow) %v825_v20, 16 }
 0x2e3   : > { %v795_v21 = vpop.xlane.xlu1 %794 }
 0x2e4   : > { %1765 = vrcp.f32 %v795_v21 }
 0x2e7   : > { %v798_v22 = vpop.xlane.xlu1 %797 }
 0x2e8   : > { %1767 = vrcp.f32 %v798_v22 }
 0x2f1   : > { %v1766_v23 = vpop.eup %1765 }
 0x2f2   : > { %v801_v27 = vmul.f32 %v1766_v23, %v1756_v42 }
 0x2f3   : > { %v878_v24 = vpop.trf.xlu0 }
 0x2f4   : > { %1637 = vmatmul.mubr.msk.bf16.vlgmr.msra.gmra.mxu0 %vm773_vm3, %v878_v24 }
 0x2f5   : > { %v1768_v25 = vpop.eup %1767 }
 0x2f6   : > { %v802_v26 = vmul.f32 %v1768_v25, %v1758_v48 }
 0x2f8   : > { %v803_v28 = vpack.c.bf16 %v802_v26, %v801_v27 }
 0x2fa   : > { %1631 = vmatmul.mubr.msk.bf16.vlgmr.msra.gmra.mxu1 %vm773_vm3, %v803_v28 }
 0x3b4   : > { %v923_v29 = vpop.f32.mrf.mxu0 }
 0x3b6   : > { %v1638_v30 = vpop.f32.mrf.mxu0 }
 0x3b8   : > { %v926_v31 = vpop.f32.mrf.mxu0 }
 0x3b9   : > { %v931_v32 = vpack.c.bf16 %v926_v31, %v923_v29 }
 0x3ba   : > { %v863_v33 = vpop.f32.mrf.mxu1  ;;  %v1639_v34 = vpop.f32.mrf.mxu0 }
 0x3bc   : > { %v1632_v35 = vpop.f32.mrf.mxu1  ;;  %935 = sbr.rel (%p1543_p0) target bundleno = 964 (0x3c4), region = 80 }
 0x3be   : > { %v866_v36 = vpop.f32.mrf.mxu1 }
 0x3bf   : > { %v930_v37 = vpack.c.bf16 %v866_v36, %v863_v33 }
 0x3c0   : > { %v1633_v38 = vpop.f32.mrf.mxu1 }
 0x3c1   : > { %v1544_v39 = vld [vmem:[%s2263_s6] ss:$0 sm:$0xff] }
 0x3c2   : > { %943 = vst.msk [vmem:[#allocation2] sm:$0xff] %vm593_vm0, %v1544_v39  ;;  %944 = vst.msk [vmem:[#allocation2 + $0x8] sm:$0xff] %vm593_vm0, %v1544_v39 }
 0x3c3   : > { %945 = vst.msk [vmem:[#allocation2 + $0x10] sm:$0xff] %vm593_vm0, %v1544_v39  ;;  %946 = vst.msk [vmem:[#allocation2 + $0x18] sm:$0xff] %vm593_vm0, %v1544_v39 }
 0x3c4 PF: > { %v951_v40 = vld [vmem:[%s2057_s20] sm:$0xf]  ;;  %vm958_vm4 = vcmask 1043456   ;;  %1642 = vmatprep.mubr.msk.bf16.mxu1 %vm725_vm2, %v930_v37  ;;  %p1547_p1 = scmp.ne.s32.totalorder %s1869_s16, 3 }
 0x3c5   : > { %1674 = vmatprep.subr.msk.bf16.mxu1 %vm958_vm4, %v951_v40  ;;  %v960_v41 = vsel %vm958_vm4, %v951_v40, 0 }
 0x3c6   : > { %1641 = vmatpush3.bf16.msra.mxu1 %v960_v41 }
 0x3c9   : > { %1643 = vmatmul.mubr.msk.bf16.vlgmr.msra.gmra.mxu1 %vm725_vm2, %v931_v32  ;;  %v947_v44 = vld [vmem:[#allocation2] sm:$0xff]  ;;  %v948_v50 = vld [vmem:[#allocation2 + $0x8] sm:$0xff] }
 0x3ca   : > { %v949_v42 = vld [vmem:[#allocation2 + $0x10] sm:$0xff]  ;;  %v950_v47 = vld [vmem:[#allocation2 + $0x18] sm:$0xff] }
 0x489   : > { %v1644_v43 = vpop.f32.mrf.mxu1 }
 0x48a   : > { %v1013_v45 = vadd.f32 %v1644_v43, %v949_v42 }
 0x48b   : > { %v996_v46 = vpop.f32.mrf.mxu1 }
 0x48c   : > { %1017 = vst.msk [vmem:[#allocation2 + $0x10] sm:$0xff] %vm593_vm0, %v1013_v45  ;;  %v1011_v48 = vadd.f32 %v996_v46, %v947_v44 }
 0x48d   : > { %v1645_v49 = vpop.f32.mrf.mxu1 }
 0x48e   : > { %1015 = vst.msk [vmem:[#allocation2] sm:$0xff] %vm593_vm0, %v1011_v48  ;;  %v1014_v51 = vadd.f32 %v1645_v49, %v950_v47  ;;  %1022 = sbr.rel (%p1547_p1) target bundleno = 1930 (0x78a), region = 84 }
 0x48f   : > { %v999_v52 = vpop.f32.mrf.mxu1 }
 0x490   : > { %1018 = vst.msk [vmem:[#allocation2 + $0x18] sm:$0xff] %vm593_vm0, %v1014_v51  ;;  %v1012_v53 = vadd.f32 %v999_v52, %v948_v50 }
 0x492   : > { %1016 = vst.msk [vmem:[#allocation2 + $0x8] sm:$0xff] %vm593_vm0, %v1012_v53 }
 0x493   : > { %v1769_v54 = vld [vmem:[%s2265_s8 + $0x8] sm:$0xff]   ;;  %v1770_v55 = vld [vmem:[%s2265_s8] sm:$0xff]   ;;  %v1025_v58 = vld [vmem:[#allocation2 + $0x10] sm:$0xff]  ;;  %vm1176_vm5 = vcmask 523264  }
 0x494   : > { %1646 = vmatprep.subr.bf16.mxu1 %v1769_v54  ;;  %v1771_v61 = vld [vmem:[%s2264_s7 + $0x8] sm:$0xff]   ;;  %v1772_v63 = vld [vmem:[%s2264_s7] sm:$0xff]   ;;  %v1773_v45 = vld [vmem:[%s2269_s12 + $0x18] sm:$0xff]  }
 0x495   : > { %v1023_v56 = vld [vmem:[#allocation2] sm:$0xff]  ;;  %1647 = vmatpush3.bf16.msra.mxu1 %v1769_v54  ;;  %v1774_v46 = vld [vmem:[%s2269_s12 + $0x10] sm:$0xff]   ;;  %1662 = vmatprep.subr.bf16.mxu0 %v1773_v45  ;;  %v1775_v47 = vld [vmem:[%s2269_s12 + $0x8] sm:$0xff]  }
 0x496   : > { %1648 = vmatprep.subr.bf16.mxu1 %v1770_v55  ;;  %v1556_v11 = vld [vmem:[%s2266_s9] ss:$0 sm:$0xff]  ;;  %1663 = vmatpush3.bf16.msra.mxu0 %v1773_v45 }
 0x497   : > { %v1026_v60 = vld [vmem:[#allocation2 + $0x18] sm:$0xff]  ;;  %1664 = vmatprep.subr.bf16.mxu0 %v1774_v46  ;;  %v1776_v48 = vld [vmem:[%s2269_s12] sm:$0xff]  }
 0x498   : > { %v1032_v62 = vpack.c.bf16 %v1026_v60, %v1025_v58 }
 0x499   : > { %v1024_v57 = vld [vmem:[#allocation2 + $0x8] sm:$0xff]  ;;  %1649 = vmatpush3.bf16.msra.mxu1 %v1770_v55 }
 0x49a   : > { %v1031_v59 = vpack.c.bf16 %v1024_v57, %v1023_v56  ;;  %1654 = vmatprep.subr.bf16.mxu1 %v1771_v61  ;;  %1665 = vmatpush3.bf16.msra.mxu0 %v1774_v46 }
 0x49b   : > { %1666 = vmatprep.subr.bf16.mxu0 %v1775_v47 }
 0x49c   : > { %1650 = vmatprep.mubr.msk.bf16.mxu1 %vm593_vm0, %v1031_v59 }
 0x49d   : > { %1651 = vmatmul.mubr.msk.bf16.vlgmr.msra.gmra.mxu1 %vm593_vm0, %v1032_v62  ;;  %v1557_v62 = vld [vmem:[%s2267_s10] ss:$0 sm:$0xff] }
 0x49e   : > { %1655 = vmatpush3.bf16.msra.mxu1 %v1771_v61  ;;  %1658 = vmatprep.mubr.msk.bf16.mxu1 %vm593_vm0, %v2068_v4 }
 0x49f   : > { %1656 = vmatprep.subr.bf16.mxu1 %v1772_v63  ;;  %1667 = vmatpush3.bf16.msra.mxu0 %v1775_v47 }
 0x4a0   : > { %1668 = vmatprep.subr.bf16.mxu0 %v1776_v48 }
 0x4a2   : > { %1657 = vmatpush3.bf16.msra.mxu1 %v1772_v63 }
 0x4a3   : > { %1669 = vmatpush3.bf16.msra.mxu0 %v1776_v48 }
 0x4a5   : > { %1659 = vmatmul.mubr.msk.bf16.vlgmr.msra.gmra.mxu1 %vm593_vm0, %v2080_v7 }
 0x55d   : > { %v1652_v0 = vpop.f32.mrf.mxu1 }
 0x55f   : > { %v1089_v1 = vpop.f32.mrf.mxu1 }
 0x561   : > { %v1653_v8 = vpop.f32.mrf.mxu1 }
 0x563   : > { %v1092_v9 = vpop.f32.mrf.mxu1 }
 0x565   : > { %v1660_v10 = vpop.f32.mrf.mxu1 }
 0x566   : > { %v1159_v12 = vadd.f32 %v1660_v10, %v1652_v0  ;;  %v1558_v0 = vld [vmem:[%s2268_s11] ss:$0 sm:$0xff] }
 0x567   : > { %v1150_v13 = vpop.f32.mrf.mxu1 }
 0x568   : > { %v1151_v14 = vadd.f32 %v1150_v13, %v1089_v1  ;;  %v1174_v15 = vadd.f32 %v1556_v11, %v1159_v12 }
 0x569   : > { %v1661_v4 = vpop.f32.mrf.mxu1 }
 0x56a   : > { %v1162_v16 = vadd.f32 %v1661_v4, %v1653_v8  ;;  %v1183_v17 = vsel %vm1176_vm5, %v1174_v15, 0.0  ;;  %v1172_v18 = vadd.f32 %v1556_v11, %v1151_v14 }
 0x56b   : > { %1184 = vadd.xlane.f32.xlu1 %v1183_v17  ;;  %v1153_v7 = vpop.f32.mrf.mxu1 }
 0x56c   : > { %v1154_v19 = vadd.f32 %v1153_v7, %v1092_v9  ;;  %v1177_v20 = vsel %vm1176_vm5, %v1172_v18, 0.0  ;;  %v1175_v21 = vadd.f32 %v1556_v11, %v1162_v16 }
 0x56d   : > { %1178 = vadd.xlane.f32.xlu0 %v1177_v20 }
 0x56e   : > { %v1186_v22 = vsel %vm1176_vm5, %v1175_v21, 0.0  ;;  %v1173_v23 = vadd.f32 %v1556_v11, %v1154_v19 }
 0x56f   : > { %1187 = vadd.xlane.f32.xlu1 %v1186_v22 }
 0x570   : > { %v1180_v24 = vsel %vm1176_vm5, %v1173_v23, 0.0 }
 0x571   : > { %1181 = vadd.xlane.f32.xlu0 %v1180_v24 }
 0x5f4   : > { %v1185_v25 = vpop.xlane.xlu1 %1184 }
 0x5f5   : > { %v1192_v26 = vmul.f32 0.015625, %v1185_v25 }
 0x5f6   : > { %v1179_v27 = vpop.xlane.xlu0 %1178 }
 0x5f7   : > { %v1190_v28 = vmul.f32 0.015625, %v1179_v27  ;;  %v1196_v30 = vsub.f32 %v1174_v15, %v1192_v26 }
 0x5f8   : > { %v1188_v29 = vpop.xlane.xlu1 %1187 }
 0x5f9   : > { %v1194_v31 = vsub.f32 %v1172_v18, %v1190_v28  ;;  %v1193_v32 = vmul.f32 0.015625, %v1188_v29  ;;  %v1200_v39 = vmul.f32 %v1196_v30, %v1196_v30 }
 0x5fa   : > { %v1182_v33 = vpop.xlane.xlu0 %1181 }
 0x5fb   : > { %v1191_v34 = vmul.f32 0.015625, %v1182_v33  ;;  %v1198_v35 = vmul.f32 %v1194_v31, %v1194_v31  ;;  %v1197_v36 = vsub.f32 %v1175_v21, %v1193_v32  ;;  %v1208_v41 = vsel %vm1176_vm5, %v1200_v39, 0.0 }
 0x5fd   : > { %v1195_v37 = vsub.f32 %v1173_v23, %v1191_v34  ;;  %v1202_v38 = vsel %vm1176_vm5, %v1198_v35, 0.0  ;;  %v1201_v43 = vmul.f32 %v1197_v36, %v1197_v36 }
 0x5fe   : > { %1203 = vadd.xlane.f32.xlu0 %v1202_v38 }
 0x5ff   : > { %v1199_v40 = vmul.f32 %v1195_v37, %v1195_v37  ;;  %v1211_v44 = vsel %vm1176_vm5, %v1201_v43, 0.0 }
 0x601   : > { %v1205_v42 = vsel %vm1176_vm5, %v1199_v40, 0.0 }
 0x602   : > { %1209 = vadd.xlane.f32.xlu0 %v1208_v41  ;;  %1206 = vadd.xlane.f32.xlu1 %v1205_v42  ;;  %v1559_v41 = vld [vmem:[%s2270_s13] ss:$0 sm:$0xff] }
 0x606   : > { %1212 = vadd.xlane.f32.xlu1 %v1211_v44 }
 0x687   : > { %v1204_v49 = vpop.xlane.xlu0 %1203 }
 0x688   : > { %v1214_v50 = vmul.f32 0.015625, %v1204_v49 }
 0x68a   : > { %v1218_v51 = vadd.f32 1e-05, %v1214_v50 }
 0x68b   : > { %v1207_v52 = vpop.xlane.xlu1 %1206  ;;  %v1210_v53 = vpop.xlane.xlu0 %1209 }
 0x68c   : > { %1777 = vrsqrt.f32 %v1218_v51  ;;  %v1215_v54 = vmul.f32 0.015625, %v1207_v52  ;;  %v1216_v55 = vmul.f32 0.015625, %v1210_v53 }
 0x68e   : > { %v1219_v56 = vadd.f32 1e-05, %v1215_v54  ;;  %v1220_v57 = vadd.f32 1e-05, %v1216_v55 }
 0x68f   : > { %v1213_v58 = vpop.xlane.xlu1 %1212 }
 0x690   : > { %1779 = vrsqrt.f32 %v1219_v56  ;;  %v1217_v59 = vmul.f32 0.015625, %v1213_v58 }
 0x691   : > { %1781 = vrsqrt.f32 %v1220_v57 }
 0x692   : > { %v1221_v60 = vadd.f32 1e-05, %v1217_v59 }
 0x694   : > { %1783 = vrsqrt.f32 %v1221_v60 }
 0x699   : > { %v1778_v61 = vpop.eup %1777 }
 0x69a   : > { %v1226_v63 = vmul.f32 %v1778_v61, %v1194_v31 }
 0x69c   : > { %v1237_v1 = vmul.f32 %v1557_v62, %v1226_v63 }
 0x69d   : > { %v1780_v8 = vpop.eup %1779 }
 0x69e   : > { %v1782_v9 = vpop.eup %1781  ;;  %v1227_v10 = vmul.f32 %v1780_v8, %v1195_v37  ;;  %v1248_v11 = vadd.f32 %v1558_v0, %v1237_v1 }
 0x69f   : > { %v1228_v12 = vmul.f32 %v1782_v9, %v1196_v30 }
 0x6a0   : > { %v1238_v13 = vmul.f32 %v1557_v62, %v1227_v10  ;;  %v1256_v14 = vmul.f32 0.70710677, %v1248_v11  ;;  %v1252_v27 = vmul.f32 0.5, %v1248_v11 }
 0x6a1   : > { %v1784_v15 = vpop.eup %1783  ;;  %v1239_v4 = vmul.f32 %v1557_v62, %v1228_v12 }
 0x6a2   : > { %v1229_v16 = vmul.f32 %v1784_v15, %v1197_v36  ;;  %v1249_v17 = vadd.f32 %v1558_v0, %v1238_v13  ;;  %1785 = verf.f32 %v1256_v14 }
 0x6a3   : > { %v1250_v18 = vadd.f32 %v1558_v0, %v1239_v4 }
 0x6a4   : > { %v1257_v7 = vmul.f32 0.70710677, %v1249_v17  ;;  %v1240_v19 = vmul.f32 %v1557_v62, %v1229_v16  ;;  %v1253_v28 = vmul.f32 0.5, %v1249_v17 }
 0x6a5   : > { %v1258_v20 = vmul.f32 0.70710677, %v1250_v18  ;;  %v1254_v35 = vmul.f32 0.5, %v1250_v18 }
 0x6a6   : > { %1787 = verf.f32 %v1257_v7  ;;  %v1251_v21 = vadd.f32 %v1558_v0, %v1240_v19 }
 0x6a7   : > { %1789 = verf.f32 %v1258_v20 }
 0x6a8   : > { %v1259_v22 = vmul.f32 0.70710677, %v1251_v21  ;;  %v1255_v36 = vmul.f32 0.5, %v1251_v21 }
 0x6aa   : > { %1791 = verf.f32 %v1259_v22 }
 0x6af   : > { %v1786_v23 = vpop.eup %1785 }
 0x6b0   : > { %v1264_v24 = vadd.f32 1.0, %v1786_v23 }
 0x6b2   : > { %v1268_v30 = vmul.f32 %v1264_v24, %v1252_v27 }
 0x6b3   : > { %v1788_v25 = vpop.eup %1787 }
 0x6b4   : > { %v1790_v26 = vpop.eup %1789  ;;  %v1265_v29 = vadd.f32 1.0, %v1788_v25 }
 0x6b5   : > { %v1266_v32 = vadd.f32 1.0, %v1790_v26 }
 0x6b6   : > { %v1269_v31 = vmul.f32 %v1265_v29, %v1253_v28 }
 0x6b7   : > { %v1792_v33 = vpop.eup %1791  ;;  %v1270_v38 = vmul.f32 %v1266_v32, %v1254_v35 }
 0x6b8   : > { %v1272_v34 = vpack.c.bf16 %v1269_v31, %v1268_v30  ;;  %v1267_v37 = vadd.f32 1.0, %v1792_v33 }
 0x6ba   : > { %1670 = vmatprep.mubr.msk.bf16.mxu0 %vm1176_vm5, %v1272_v34  ;;  %v1271_v39 = vmul.f32 %v1267_v37, %v1255_v36 }
 0x6bc   : > { %v1273_v40 = vpack.c.bf16 %v1271_v39, %v1270_v38 }
 0x6be   : > { %1671 = vmatmul.mubr.msk.bf16.vlgmr.msra.gmra.mxu0 %vm1176_vm5, %v1273_v40 }
 0x77e   : > { %v1672_v42 = vpop.f32.mrf.mxu0 }
 0x77f   : > { %v1362_v43 = vadd.f32 %v1672_v42, %v1559_v41 }
 0x780   : > { %v1353_v44 = vpop.f32.mrf.mxu0 }
 0x781   : > { %v1370_v45 = vadd.f32 %v1362_v43, %v2070_v5  ;;  %v1354_v46 = vadd.f32 %v1559_v41, %v1353_v44 }
 0x782   : > { %v1673_v47 = vpop.f32.mrf.mxu0 }
 0x783   : > { %1374 = vst.msk [vmem:[%s2113_s18 + $0x10] sm:$0xff] %vm593_vm0, %v1370_v45  ;;  %v1368_v48 = vadd.f32 %v1354_v46, %v2062_v2  ;;  %v1365_v49 = vadd.f32 %v1673_v47, %v1559_v41 }
 0x784   : > { %v1356_v50 = vpop.f32.mrf.mxu0 }
 0x785   : > { %1372 = vst.msk [vmem:[%s2113_s18] sm:$0xff] %vm593_vm0, %v1368_v48  ;;  %v1371_v51 = vadd.f32 %v1365_v49, %v2072_v6  ;;  %v1357_v52 = vadd.f32 %v1559_v41, %v1356_v50 }
 0x787   : > { %1375 = vst.msk [vmem:[%s2113_s18 + $0x18] sm:$0xff] %vm593_vm0, %v1371_v51  ;;  %v1369_v53 = vadd.f32 %v1357_v52, %v2064_v3 }
 0x789   : > { %1373 = vst.msk [vmem:[%s2113_s18 + $0x8] sm:$0xff] %vm593_vm0, %v1369_v53 }
 0x78a PF: > { %s2299_s24 = sld [smem:[#allocation7_spill]]  ;;  %s1574_s26 = sshll.u32 %s1873_s17, 9 }
 0x78b   : > { %s2301_s27 = sld [smem:[#allocation17_spill]]  ;;  %s1390_s23 = sshll.u32 %s2113_s18, 4  ;;  %s2202_s23 = int_to_ptr.vmem [resolvable:$true] %s1390_s23 }
 0x78c   : > { %s1793_s29 = scalar_lea.vmem %s2202_s23, 512  ;;  %s1889_s17 = smov [#allocation3]  }
 0x78d   : > { %p1794_p2 = scmp.ne.s32.totalorder %s2202_s23, %s1793_s29  ;;  %s1797_s30 = sshll.u32 %s1889_s17, 4  ;;  %s1798_s30 = int_to_ptr.vmem [resolvable:$false] %s1797_s30 }
 0x78e   : > { %s1799_s16 = scalar_lea.vmem %s1798_s30, 1024  ;;  %p1800_p6 = scmp.lt.s32.totalorder %s2202_s23, %s1798_s30 }
 0x78f   : > { %p1795_p4 = pnand %p1794_p2, %p2016_p3  ;;  %p1801_p7 = scmp.lt.s32.totalorder %s1799_s16, %s1793_s29 }
 0x790   : > { %s2302_s28 = sand.u32 1, %s2299_s24  }
 0x791   : > { %s2199_s20 = scalar_lea.hbm %s2301_s27, %s1574_s26  ;;  %s2206_s14 = scalar_lea.sflag [#allocation4], %s2302_s28 }
 0x792   : > { %p1796_p5 = pneg %p1795_p4  ;;  %p1802_p8 = por %p1801_p7, %p1800_p6 }
 0x794   : > { %p1803_p10 = pnand %p1802_p8, %p1796_p5 }
 0x796   : > { %1806 = shalt.err (!%p1803_p10)
}
 0x797   : > { %s1807_s18 = scalar_lea.hbm %s2199_s20, 512  ;;  %s1811_s24 = scalar_lea.hbm %s2301_s27, 1024 }
 0x798   : > { %p1808_p11 = scmp.ne.s32.totalorder %s2199_s20, %s1807_s18  ;;  %p1812_p0 = scmp.lt.s32.totalorder %s2199_s20, %s2301_s27 }
 0x799   : > { %p1813_p1 = scmp.lt.s32.totalorder %s1811_s24, %s1807_s18 }
 0x79a   : > { %p1809_p12 = pnand %p1808_p11, %p2016_p3 }
 0x79b   : > { %p1814_p2 = por %p1813_p1, %p1812_p0 }
 0x79c   : > { %p1810_p13 = pneg %p1809_p12 }
 0x79e   : > { %p1815_p4 = pnand %p1814_p2, %p1810_p13 }
 0x7a0   : > { %1818 = shalt.err (!%p1815_p4)
}
 0x7a1   : > { %s1890_s22 = smov 128   ;;  %s1891_s28 = smov 8  }
 0x7a2   : > { %1675 = dma.vmem_to_hbm [thread:$0]  (%p2016_p3), %s2202_s23, 512, %s2199_s20, %s2206_s14, %s1890_s22, %s1890_s22, %s1891_s28  }
 0x7a3 PF: > { %s2303_s29 = sld [smem:[#allocation11_spill]] }
 0x7a4   : > { %s2304_s17 = sld [smem:[#allocation6_spill]] }
 0x7a9   : > { %p1681_p5 = scmp.ge.s32.totalorder %s2303_s29, 2 }
 0x7aa   : > { %s1405_s16 = sand.u32 1, %s2304_s17  }
 0x7ab   : > { %p1678_p6 = pnand %p1681_p5, %p2026_p9  ;;  %s1406_s18 = scalar_lea.sflag [#allocation4], %s1405_s16 }
 0x7ad   : > { %p1679_p7 = pneg %p1678_p6 }
 0x7af   : > { %1852 = dma.done.wait (%p1679_p7), %s1406_s18, 512  }
 0x7b0   : > { %1854 = vsyncadd (%p1679_p7), %s1406_s18, 4294966784  ;;  %s27_s20 = sadd.s32 1, %s2303_s29   ;;  %s2306_s29 = sld [smem:[#allocation7_spill]] }
 0x7b1   : > { %p24_p8 = scmp.ge.s32.totalorder %s27_s20, 10   ;;  %s2307_s30 = sld [smem:[#allocation8_spill]] }
 0x7b2   : > { %s2308_s15 = sld [smem:[#allocation16_spill]] }
 0x7b3   : > { %s2309_s16 = sld [smem:[#allocation9_spill]]  ;;  %26 = sbr.rel (!%p24_p8) target bundleno = 7 (0x7), region = 134 }
 0x7b4   : > { %s2310_s17 = sld [smem:[#allocation10_spill]] }
 0x7b5   : > { %s2311_s18 = sld [smem:[#allocation12_spill]] }
 0x7b6   : > { %s2312_s19 = sld [smem:[#allocation14_spill]] }
 0x7b8   :  { %1411 = vsyncpa [#allocation4], 1 }
 0x7b9   :  { %1413 = vsyncpa [#allocation4 + $0x1], 1 }

</bundles_post_ra>
